<compile_context>
chip_gen: v7x
topology: tpu7x:2x2x1
jax: 0.10.0
libtpu: 0.0.40
codegen_flags: <defaults>
</compile_context>

<pallas_src>
import functools

import jax
import jax.numpy as jnp
from jax.experimental import pallas as pl
from jax.experimental.pallas import tpu as pltpu

LEAKY_SLOPE = 0.2
BN_EPS = 0.8  # nn.BatchNorm1d(out_feat, 0.8): 2nd positional arg is eps, not momentum

HIDDEN_DIMS = (32, 64, 128, 256, 512)


# ---------------------------------------------------------------------------
# Kernel 1: fused 5-block MLP trunk (all weights fit comfortably in VMEM).
# Single invocation (no grid); everything resident in VMEM.
# ---------------------------------------------------------------------------
def _linear(x, w_ref, b_ref):
    return jnp.dot(x, w_ref[...], preferred_element_type=jnp.float32) + b_ref[...]


def _leaky(x):
    return jnp.where(x > 0, x, LEAKY_SLOPE * x)


def _bn_train(x, g_ref, b_ref):
    # BatchNorm1d in training mode: normalize with batch mean / biased batch var.
    mean = jnp.mean(x, axis=0, keepdims=True)
    var = jnp.mean((x - mean) ** 2, axis=0, keepdims=True)
    xhat = (x - mean) * jax.lax.rsqrt(var + BN_EPS)
    return xhat * g_ref[...] + b_ref[...]


def mlp_trunk_kernel(z_ref,
                     w1, b1,
                     w2, b2, g2, be2,
                     w3, b3, g3, be3,
                     w4, b4, g4, be4,
                     w5, b5, g5, be5,
                     h_ref):
    x = z_ref[...]
    if x.dtype != jnp.float32:          # trace-time check; no redundant cast for f32 z
        x = x.astype(jnp.float32)
    x = _leaky(_linear(x, w1, b1))                          # block(in,   32, normalize=False)
    x = _leaky(_bn_train(_linear(x, w2, b2), g2, be2))      # block(32,   64)
    x = _leaky(_bn_train(_linear(x, w3, b3), g3, be3))      # block(64,  128)
    x = _leaky(_bn_train(_linear(x, w4, b4), g4, be4))      # block(128, 256)
    x = _leaky(_bn_train(_linear(x, w5, b5), g5, be5))      # block(256, 512)
    h_ref[...] = x


# ---------------------------------------------------------------------------
# Kernel 2: final Linear(512, prod(img_shape)) + Tanh, tiled over output cols.
# h / w arrive in bf16 (HBM-bound stream halved); accumulate in f32 on the MXU.
# ---------------------------------------------------------------------------
def head_kernel(h_ref, w_ref, b_ref, o_ref):
    y = jnp.dot(h_ref[...], w_ref[...], preferred_element_type=jnp.float32) + b_ref[...]
    o_ref[...] = jnp.tanh(y)


def _pick_tn(n_out, cap=4096):
    """Largest multiple of 128 dividing n_out, capped so the double-buffered
    bf16 weight tile (512 * tn * 2 bytes * 2 buffers) stays well inside v7x's
    64 MiB VMEM while keeping the grid short on v5e/v6e too."""
    best = 128
    t = 128
    limit = min(n_out, cap)
    while t <= limit:
        if n_out % t == 0:
            best = t
        t += 128
    return best


# ---------------------------------------------------------------------------
# Parameter construction (deterministic, PyTorch-style uniform init).
# Head weight is stored in bf16 (streamed from HBM every forward pass).
# ---------------------------------------------------------------------------
def init_params(key, input_dim, img_shape):
    out_dim = 1
    for d in img_shape:
        out_dim *= int(d)

    dims = (input_dim,) + HIDDEN_DIMS + (out_dim,)
    params = []
    last = len(dims) - 2
    for i in range(len(dims) - 1):
        fan_in, fan_out = dims[i], dims[i + 1]
        key, kw, kb = jax.random.split(key, 3)
        bound = 1.0 / (fan_in ** 0.5)
        w = jax.random.uniform(kw, (fan_in, fan_out), jnp.float32, -bound, bound)
        b = jax.random.uniform(kb, (1, fan_out), jnp.float32, -bound, bound)
        if i == last:
            w = w.astype(jnp.bfloat16)  # head weight streamed in bf16
        entry = {"w": w, "b": b}
        # Blocks 2..5 (hidden layers after the first) carry BatchNorm params.
        if 1 <= i <= 4:
            entry["gamma"] = jnp.ones((1, fan_out), jnp.float32)
            entry["beta"] = jnp.zeros((1, fan_out), jnp.float32)
        params.append(entry)
    return params


# ---------------------------------------------------------------------------
# Forward wrapper.
# ---------------------------------------------------------------------------
@functools.partial(jax.jit, static_argnames=("img_shape", "tn"))
def generator_forward(z, params, img_shape, tn=None):
    B = z.shape[0]

    p1, p2, p3, p4, p5, p6 = params

    # --- trunk: single-shot Pallas kernel, everything in VMEM --------------
    # Batch statistics for BatchNorm are computed here over the REAL batch
    # (no padding), matching PyTorch train-mode semantics.
    h = pl.pallas_call(
        mlp_trunk_kernel,
        out_shape=jax.ShapeDtypeStruct((B, HIDDEN_DIMS[-1]), jnp.float32),
    )(
        z,
        p1["w"], p1["b"],
        p2["w"], p2["b"], p2["gamma"], p2["beta"],
        p3["w"], p3["b"], p3["gamma"], p3["beta"],
        p4["w"], p4["b"], p4["gamma"], p4["beta"],
        p5["w"], p5["b"], p5["gamma"], p5["beta"],
    )

    # --- head: tiled Linear(512, prod(img_shape)) + tanh --------------------
    w6, b6 = p6["w"], p6["b"]
    hidden, n_out = w6.shape
    assert n_out % 128 == 0, "prod(img_shape) must be a multiple of 128 lanes"

    if tn is None:
        tn = _pick_tn(n_out)
    assert n_out % tn == 0 and tn % 128 == 0

    # Pad the batch to the 8-row sublane tile so output stores are unmasked
    # full-sublane vst's; padded rows are dropped after the call. Cast the
    # (tiny, resident) activation to bf16 so the dot runs the bf16 MXU path.
    B_pad = ((B + 7) // 8) * 8
    h = jnp.pad(h, ((0, B_pad - B), (0, 0))).astype(w6.dtype)

    # Explicit VMEM budget from the actual (double-buffered) tile sizes,
    # capped so it is safe on v7x's 64 MiB VMEM as well as v5e/v6e.
    w_bytes = hidden * tn * w6.dtype.itemsize
    b_bytes = tn * b6.dtype.itemsize
    o_bytes = B_pad * tn * 4
    h_bytes = B_pad * hidden * h.dtype.itemsize
    needed = 2 * (w_bytes + b_bytes + o_bytes + h_bytes)
    vmem_limit = int(min(max(2 * needed, 16 << 20), 48 << 20))

    flat = pl.pallas_call(
        head_kernel,
        out_shape=jax.ShapeDtypeStruct((B_pad, n_out), jnp.float32),
        grid_spec=pltpu.PrefetchScalarGridSpec(
            num_scalar_prefetch=0,
            grid=(n_out // tn,),
            in_specs=[
                pl.BlockSpec((B_pad, hidden), lambda j: (0, 0)),   # h: resident, reused
                pl.BlockSpec((hidden, tn), lambda j: (0, j)),      # weight column tile (bf16)
                pl.BlockSpec((1, tn), lambda j: (0, j)),           # bias tile
            ],
            out_specs=pl.BlockSpec((B_pad, tn), lambda j: (0, j)),
        ),
        compiler_params=pltpu.CompilerParams(
            dimension_semantics=("parallel",),   # shardable across v7x's 2 TCs
            vmem_limit_bytes=vmem_limit,
        ),
    )(h, w6, b6)

    # glue: drop batch padding, then view(B, *img_shape) -> NCHW image
    return flat[:B].reshape((B,) + tuple(img_shape))


if __name__ == "__main__":
    # Small, module-consistent demo shapes.
    batch = 2
    input_dim = 32
    img_shape = (3, 16, 16)  # demo-sized; module default is (3, 512, 512)

    key = jax.random.PRNGKey(0)
    kz, kp = jax.random.split(key)
    z = jax.random.normal(kz, (batch, input_dim), jnp.float32)
    params = init_params(kp, input_dim, img_shape)

    img = generator_forward(z, params, img_shape)
    jax.block_until_ready(img)

    assert img.shape == (batch,) + img_shape
    assert img.dtype == jnp.float32
    assert bool(jnp.all(jnp.abs(img) <= 1.0))  # tanh range sanity check
    print("KERNEL_OK")
</pallas_src>

<mosaic_0001>
module attributes {stable_mosaic.version = 11 : i64} {
  func.func @head_kernel(%arg0: i32, %arg1: memref<8x512xbf16, #tpu.memory_space<vmem>>, %arg2: memref<512x768xbf16, #tpu.memory_space<vmem>>, %arg3: memref<1x768xf32, #tpu.memory_space<vmem>>, %arg4: memref<8x768xf32, #tpu.memory_space<vmem>>) attributes {dimension_semantics = [#tpu.dimension_semantics<parallel>], iteration_bounds = array<i64: 1>, scalar_prefetch = 0 : i64, scratch_operands = 0 : i64, tpu.core_type = #tpu.core_type<tc>, window_params = [{pipeline_mode = #tpu.pipeline_mode<synchronous>, transform_indices = @transform_0, window_bounds = array<i64: 8, 512>}, {transform_indices = @transform_1, window_bounds = array<i64: 512, 768>}, {transform_indices = @transform_2, window_bounds = array<i64: 1, 768>}, {transform_indices = @transform_3, window_bounds = array<i64: 8, 768>}]} {
    %c0 = arith.constant 0 : index
    %c0_0 = arith.constant 0 : index
    %0 = vector.load %arg1[%c0, %c0_0] : memref<8x512xbf16, #tpu.memory_space<vmem>>, vector<8x512xbf16>
    %c0_1 = arith.constant 0 : index
    %c0_2 = arith.constant 0 : index
    %1 = vector.load %arg2[%c0_1, %c0_2] : memref<512x768xbf16, #tpu.memory_space<vmem>>, vector<512x768xbf16>
    %cst = arith.constant dense<0.000000e+00> : vector<8x768xf32>
    %2 = tpu.matmul %0, %1, %cst {dimension_numbers = #tpu.dot_dimension_numbers<[1], [0], [0], [1], [0, 0, 1, 1], [], []>} : vector<8x512xbf16>, vector<512x768xbf16>, vector<8x768xf32> -> vector<8x768xf32>
    %c0_3 = arith.constant 0 : index
    %c0_4 = arith.constant 0 : index
    %3 = vector.load %arg3[%c0_3, %c0_4] : memref<1x768xf32, #tpu.memory_space<vmem>>, vector<1x768xf32>
    %4 = vector.broadcast %3 : vector<1x768xf32> to vector<8x768xf32>
    %5 = arith.addf %2, %4 : vector<8x768xf32>
    %6 = math.tanh %5 : vector<8x768xf32>
    %c0_5 = arith.constant 0 : index
    %c0_6 = arith.constant 0 : index
    %7 = vector.load %arg4[%c0_5, %c0_6] : memref<8x768xf32, #tpu.memory_space<vmem>>, vector<8x768xf32>
    tpu.vector_store %arg4[%c0_5, %c0_6], %6 {strides = array<i32>} : memref<8x768xf32, #tpu.memory_space<vmem>>, vector<8x768xf32>,
    return
  }
  func.func @transform_0(%arg0: i32) -> (i32, i32) {
    %c0_i32 = arith.constant 0 : i32
    %c0_i32_0 = arith.constant 0 : i32
    %c0_i32_1 = arith.constant 0 : i32
    return %c0_i32, %c0_i32_0 : i32, i32
  }
  func.func @transform_1(%arg0: i32) -> (i32, i32) {
    %c0_i32 = arith.constant 0 : i32
    %c0_i32_0 = arith.constant 0 : i32
    return %c0_i32, %arg0 : i32, i32
  }
  func.func @transform_2(%arg0: i32) -> (i32, i32) {
    %c0_i32 = arith.constant 0 : i32
    %c0_i32_0 = arith.constant 0 : i32
    return %c0_i32, %arg0 : i32, i32
  }
  func.func @transform_3(%arg0: i32) -> (i32, i32) {
    %c0_i32 = arith.constant 0 : i32
    %c0_i32_0 = arith.constant 0 : i32
    return %c0_i32, %arg0 : i32, i32
  }
}

module attributes {stable_mosaic.version = 11 : i64} {
  func.func @mlp_trunk_kernel(%arg0: memref<2x32xf32, #tpu.memory_space<vmem>>, %arg1: memref<32x32xf32, #tpu.memory_space<vmem>>, %arg2: memref<1x32xf32, #tpu.memory_space<vmem>>, %arg3: memref<32x64xf32, #tpu.memory_space<vmem>>, %arg4: memref<1x64xf32, #tpu.memory_space<vmem>>, %arg5: memref<1x64xf32, #tpu.memory_space<vmem>>, %arg6: memref<1x64xf32, #tpu.memory_space<vmem>>, %arg7: memref<64x128xf32, #tpu.memory_space<vmem>>, %arg8: memref<1x128xf32, #tpu.memory_space<vmem>>, %arg9: memref<1x128xf32, #tpu.memory_space<vmem>>, %arg10: memref<1x128xf32, #tpu.memory_space<vmem>>, %arg11: memref<128x256xf32, #tpu.memory_space<vmem>>, %arg12: memref<1x256xf32, #tpu.memory_space<vmem>>, %arg13: memref<1x256xf32, #tpu.memory_space<vmem>>, %arg14: memref<1x256xf32, #tpu.memory_space<vmem>>, %arg15: memref<256x512xf32, #tpu.memory_space<vmem>>, %arg16: memref<1x512xf32, #tpu.memory_space<vmem>>, %arg17: memref<1x512xf32, #tpu.memory_space<vmem>>, %arg18: memref<1x512xf32, #tpu.memory_space<vmem>>, %arg19: memref<2x512xf32, #tpu.memory_space<vmem>>) attributes {dimension_semantics = [], scalar_prefetch = 0 : i64, scratch_operands = 0 : i64, tpu.core_type = #tpu.core_type<tc>} {
    %c0 = arith.constant 0 : index
    %c0_0 = arith.constant 0 : index
    %0 = vector.load %arg0[%c0, %c0_0] : memref<2x32xf32, #tpu.memory_space<vmem>>, vector<2x32xf32>
    %c0_1 = arith.constant 0 : index
    %c0_2 = arith.constant 0 : index
    %1 = vector.load %arg1[%c0_1, %c0_2] : memref<32x32xf32, #tpu.memory_space<vmem>>, vector<32x32xf32>
    %cst = arith.constant dense<0.000000e+00> : vector<2x32xf32>
    %2 = tpu.matmul %0, %1, %cst {dimension_numbers = #tpu.dot_dimension_numbers<[1], [0], [0], [1], [0, 0, 1, 1], [], []>} : vector<2x32xf32>, vector<32x32xf32>, vector<2x32xf32> -> vector<2x32xf32>
    %c0_3 = arith.constant 0 : index
    %c0_4 = arith.constant 0 : index
    %3 = vector.load %arg2[%c0_3, %c0_4] : memref<1x32xf32, #tpu.memory_space<vmem>>, vector<1x32xf32>
    %4 = vector.broadcast %3 : vector<1x32xf32> to vector<2x32xf32>
    %5 = arith.addf %2, %4 : vector<2x32xf32>
    %cst_5 = arith.constant 0.000000e+00 : f32
    %6 = vector.broadcast %cst_5 : f32 to vector<2x32xf32>
    %7 = arith.cmpf ogt, %5, %6 : vector<2x32xf32>
    %cst_6 = arith.constant 2.000000e-01 : f32
    %8 = vector.broadcast %cst_6 : f32 to vector<2x32xf32>
    %9 = arith.mulf %8, %5 : vector<2x32xf32>
    %10 = arith.select %7, %5, %9 : vector<2x32xi1>, vector<2x32xf32>
    %c0_7 = arith.constant 0 : index
    %c0_8 = arith.constant 0 : index
    %11 = vector.load %arg3[%c0_7, %c0_8] : memref<32x64xf32, #tpu.memory_space<vmem>>, vector<32x64xf32>
    %cst_9 = arith.constant dense<0.000000e+00> : vector<2x64xf32>
    %12 = tpu.matmul %10, %11, %cst_9 {dimension_numbers = #tpu.dot_dimension_numbers<[1], [0], [0], [1], [0, 0, 1, 1], [], []>} : vector<2x32xf32>, vector<32x64xf32>, vector<2x64xf32> -> vector<2x64xf32>
    %c0_10 = arith.constant 0 : index
    %c0_11 = arith.constant 0 : index
    %13 = vector.load %arg4[%c0_10, %c0_11] : memref<1x64xf32, #tpu.memory_space<vmem>>, vector<1x64xf32>
    %14 = vector.broadcast %13 : vector<1x64xf32> to vector<2x64xf32>
    %15 = arith.addf %12, %14 : vector<2x64xf32>
    %cst_12 = arith.constant dense<0.000000e+00> : vector<64xf32>
    %16 = vector.multi_reduction <add>, %15, %cst_12 [0] : vector<2x64xf32> to vector<64xf32>
    %17 = vector.shape_cast %16 : vector<64xf32> to vector<1x64xf32>
    %cst_13 = arith.constant 2.000000e+00 : f32
    %18 = vector.broadcast %cst_13 : f32 to vector<1x64xf32>
    %19 = arith.divf %17, %18 : vector<1x64xf32>
    %20 = vector.broadcast %19 : vector<1x64xf32> to vector<2x64xf32>
    %21 = arith.subf %15, %20 : vector<2x64xf32>
    %22 = arith.mulf %21, %21 : vector<2x64xf32>
    %cst_14 = arith.constant dense<0.000000e+00> : vector<64xf32>
    %23 = vector.multi_reduction <add>, %22, %cst_14 [0] : vector<2x64xf32> to vector<64xf32>
    %24 = vector.shape_cast %23 : vector<64xf32> to vector<1x64xf32>
    %cst_15 = arith.constant 2.000000e+00 : f32
    %25 = vector.broadcast %cst_15 : f32 to vector<1x64xf32>
    %26 = arith.divf %24, %25 : vector<1x64xf32>
    %27 = vector.broadcast %19 : vector<1x64xf32> to vector<2x64xf32>
    %28 = arith.subf %15, %27 : vector<2x64xf32>
    %cst_16 = arith.constant 8.000000e-01 : f32
    %29 = vector.broadcast %cst_16 : f32 to vector<1x64xf32>
    %30 = arith.addf %26, %29 : vector<1x64xf32>
    %31 = math.rsqrt %30 : vector<1x64xf32>
    %32 = vector.broadcast %31 : vector<1x64xf32> to vector<2x64xf32>
    %33 = arith.mulf %28, %32 : vector<2x64xf32>
    %c0_17 = arith.constant 0 : index
    %c0_18 = arith.constant 0 : index
    %34 = vector.load %arg5[%c0_17, %c0_18] : memref<1x64xf32, #tpu.memory_space<vmem>>, vector<1x64xf32>
    %35 = vector.broadcast %34 : vector<1x64xf32> to vector<2x64xf32>
    %36 = arith.mulf %33, %35 : vector<2x64xf32>
    %c0_19 = arith.constant 0 : index
    %c0_20 = arith.constant 0 : index
    %37 = vector.load %arg6[%c0_19, %c0_20] : memref<1x64xf32, #tpu.memory_space<vmem>>, vector<1x64xf32>
    %38 = vector.broadcast %37 : vector<1x64xf32> to vector<2x64xf32>
    %39 = arith.addf %36, %38 : vector<2x64xf32>
    %cst_21 = arith.constant 0.000000e+00 : f32
    %40 = vector.broadcast %cst_21 : f32 to vector<2x64xf32>
    %41 = arith.cmpf ogt, %39, %40 : vector<2x64xf32>
    %cst_22 = arith.constant 2.000000e-01 : f32
    %42 = vector.broadcast %cst_22 : f32 to vector<2x64xf32>
    %43 = arith.mulf %42, %39 : vector<2x64xf32>
    %44 = arith.select %41, %39, %43 : vector<2x64xi1>, vector<2x64xf32>
    %c0_23 = arith.constant 0 : index
    %c0_24 = arith.constant 0 : index
    %45 = vector.load %arg7[%c0_23, %c0_24] : memref<64x128xf32, #tpu.memory_space<vmem>>, vector<64x128xf32>
    %cst_25 = arith.constant dense<0.000000e+00> : vector<2x128xf32>
    %46 = tpu.matmul %44, %45, %cst_25 {dimension_numbers = #tpu.dot_dimension_numbers<[1], [0], [0], [1], [0, 0, 1, 1], [], []>} : vector<2x64xf32>, vector<64x128xf32>, vector<2x128xf32> -> vector<2x128xf32>
    %c0_26 = arith.constant 0 : index
    %c0_27 = arith.constant 0 : index
    %47 = vector.load %arg8[%c0_26, %c0_27] : memref<1x128xf32, #tpu.memory_space<vmem>>, vector<1x128xf32>
    %48 = vector.broadcast %47 : vector<1x128xf32> to vector<2x128xf32>
    %49 = arith.addf %46, %48 : vector<2x128xf32>
    %cst_28 = arith.constant dense<0.000000e+00> : vector<128xf32>
    %50 = vector.multi_reduction <add>, %49, %cst_28 [0] : vector<2x128xf32> to vector<128xf32>
    %51 = vector.shape_cast %50 : vector<128xf32> to vector<1x128xf32>
    %cst_29 = arith.constant 2.000000e+00 : f32
    %52 = vector.broadcast %cst_29 : f32 to vector<1x128xf32>
    %53 = arith.divf %51, %52 : vector<1x128xf32>
    %54 = vector.broadcast %53 : vector<1x128xf32> to vector<2x128xf32>
    %55 = arith.subf %49, %54 : vector<2x128xf32>
    %56 = arith.mulf %55, %55 : vector<2x128xf32>
    %cst_30 = arith.constant dense<0.000000e+00> : vector<128xf32>
    %57 = vector.multi_reduction <add>, %56, %cst_30 [0] : vector<2x128xf32> to vector<128xf32>
    %58 = vector.shape_cast %57 : vector<128xf32> to vector<1x128xf32>
    %cst_31 = arith.constant 2.000000e+00 : f32
    %59 = vector.broadcast %cst_31 : f32 to vector<1x128xf32>
    %60 = arith.divf %58, %59 : vector<1x128xf32>
    %61 = vector.broadcast %53 : vector<1x128xf32> to vector<2x128xf32>
    %62 = arith.subf %49, %61 : vector<2x128xf32>
    %cst_32 = arith.constant 8.000000e-01 : f32
    %63 = vector.broadcast %cst_32 : f32 to vector<1x128xf32>
    %64 = arith.addf %60, %63 : vector<1x128xf32>
    %65 = math.rsqrt %64 : vector<1x128xf32>
    %66 = vector.broadcast %65 : vector<1x128xf32> to vector<2x128xf32>
    %67 = arith.mulf %62, %66 : vector<2x128xf32>
    %c0_33 = arith.constant 0 : index
    %c0_34 = arith.constant 0 : index
    %68 = vector.load %arg9[%c0_33, %c0_34] : memref<1x128xf32, #tpu.memory_space<vmem>>, vector<1x128xf32>
    %69 = vector.broadcast %68 : vector<1x128xf32> to vector<2x128xf32>
    %70 = arith.mulf %67, %69 : vector<2x128xf32>
    %c0_35 = arith.constant 0 : index
    %c0_36 = arith.constant 0 : index
    %71 = vector.load %arg10[%c0_35, %c0_36] : memref<1x128xf32, #tpu.memory_space<vmem>>, vector<1x128xf32>
    %72 = vector.broadcast %71 : vector<1x128xf32> to vector<2x128xf32>
    %73 = arith.addf %70, %72 : vector<2x128xf32>
    %cst_37 = arith.constant 0.000000e+00 : f32
    %74 = vector.broadcast %cst_37 : f32 to vector<2x128xf32>
    %75 = arith.cmpf ogt, %73, %74 : vector<2x128xf32>
    %cst_38 = arith.constant 2.000000e-01 : f32
    %76 = vector.broadcast %cst_38 : f32 to vector<2x128xf32>
    %77 = arith.mulf %76, %73 : vector<2x128xf32>
    %78 = arith.select %75, %73, %77 : vector<2x128xi1>, vector<2x128xf32>
    %c0_39 = arith.constant 0 : index
    %c0_40 = arith.constant 0 : index
    %79 = vector.load %arg11[%c0_39, %c0_40] : memref<128x256xf32, #tpu.memory_space<vmem>>, vector<128x256xf32>
    %cst_41 = arith.constant dense<0.000000e+00> : vector<2x256xf32>
    %80 = tpu.matmul %78, %79, %cst_41 {dimension_numbers = #tpu.dot_dimension_numbers<[1], [0], [0], [1], [0, 0, 1, 1], [], []>} : vector<2x128xf32>, vector<128x256xf32>, vector<2x256xf32> -> vector<2x256xf32>
    %c0_42 = arith.constant 0 : index
    %c0_43 = arith.constant 0 : index
    %81 = vector.load %arg12[%c0_42, %c0_43] : memref<1x256xf32, #tpu.memory_space<vmem>>, vector<1x256xf32>
    %82 = vector.broadcast %81 : vector<1x256xf32> to vector<2x256xf32>
    %83 = arith.addf %80, %82 : vector<2x256xf32>
    %cst_44 = arith.constant dense<0.000000e+00> : vector<256xf32>
    %84 = vector.multi_reduction <add>, %83, %cst_44 [0] : vector<2x256xf32> to vector<256xf32>
    %85 = vector.shape_cast %84 : vector<256xf32> to vector<1x256xf32>
    %cst_45 = arith.constant 2.000000e+00 : f32
    %86 = vector.broadcast %cst_45 : f32 to vector<1x256xf32>
    %87 = arith.divf %85, %86 : vector<1x256xf32>
    %88 = vector.broadcast %87 : vector<1x256xf32> to vector<2x256xf32>
    %89 = arith.subf %83, %88 : vector<2x256xf32>
    %90 = arith.mulf %89, %89 : vector<2x256xf32>
    %cst_46 = arith.constant dense<0.000000e+00> : vector<256xf32>
    %91 = vector.multi_reduction <add>, %90, %cst_46 [0] : vector<2x256xf32> to vector<256xf32>
    %92 = vector.shape_cast %91 : vector<256xf32> to vector<1x256xf32>
    %cst_47 = arith.constant 2.000000e+00 : f32
    %93 = vector.broadcast %cst_47 : f32 to vector<1x256xf32>
    %94 = arith.divf %92, %93 : vector<1x256xf32>
    %95 = vector.broadcast %87 : vector<1x256xf32> to vector<2x256xf32>
    %96 = arith.subf %83, %95 : vector<2x256xf32>
    %cst_48 = arith.constant 8.000000e-01 : f32
    %97 = vector.broadcast %cst_48 : f32 to vector<1x256xf32>
    %98 = arith.addf %94, %97 : vector<1x256xf32>
    %99 = math.rsqrt %98 : vector<1x256xf32>
    %100 = vector.broadcast %99 : vector<1x256xf32> to vector<2x256xf32>
    %101 = arith.mulf %96, %100 : vector<2x256xf32>
    %c0_49 = arith.constant 0 : index
    %c0_50 = arith.constant 0 : index
    %102 = vector.load %arg13[%c0_49, %c0_50] : memref<1x256xf32, #tpu.memory_space<vmem>>, vector<1x256xf32>
    %103 = vector.broadcast %102 : vector<1x256xf32> to vector<2x256xf32>
    %104 = arith.mulf %101, %103 : vector<2x256xf32>
    %c0_51 = arith.constant 0 : index
    %c0_52 = arith.constant 0 : index
    %105 = vector.load %arg14[%c0_51, %c0_52] : memref<1x256xf32, #tpu.memory_space<vmem>>, vector<1x256xf32>
    %106 = vector.broadcast %105 : vector<1x256xf32> to vector<2x256xf32>
    %107 = arith.addf %104, %106 : vector<2x256xf32>
    %cst_53 = arith.constant 0.000000e+00 : f32
    %108 = vector.broadcast %cst_53 : f32 to vector<2x256xf32>
    %109 = arith.cmpf ogt, %107, %108 : vector<2x256xf32>
    %cst_54 = arith.constant 2.000000e-01 : f32
    %110 = vector.broadcast %cst_54 : f32 to vector<2x256xf32>
    %111 = arith.mulf %110, %107 : vector<2x256xf32>
    %112 = arith.select %109, %107, %111 : vector<2x256xi1>, vector<2x256xf32>
    %c0_55 = arith.constant 0 : index
    %c0_56 = arith.constant 0 : index
    %113 = vector.load %arg15[%c0_55, %c0_56] : memref<256x512xf32, #tpu.memory_space<vmem>>, vector<256x512xf32>
    %cst_57 = arith.constant dense<0.000000e+00> : vector<2x512xf32>
    %114 = tpu.matmul %112, %113, %cst_57 {dimension_numbers = #tpu.dot_dimension_numbers<[1], [0], [0], [1], [0, 0, 1, 1], [], []>} : vector<2x256xf32>, vector<256x512xf32>, vector<2x512xf32> -> vector<2x512xf32>
    %c0_58 = arith.constant 0 : index
    %c0_59 = arith.constant 0 : index
    %115 = vector.load %arg16[%c0_58, %c0_59] : memref<1x512xf32, #tpu.memory_space<vmem>>, vector<1x512xf32>
    %116 = vector.broadcast %115 : vector<1x512xf32> to vector<2x512xf32>
    %117 = arith.addf %114, %116 : vector<2x512xf32>
    %cst_60 = arith.constant dense<0.000000e+00> : vector<512xf32>
    %118 = vector.multi_reduction <add>, %117, %cst_60 [0] : vector<2x512xf32> to vector<512xf32>
    %119 = vector.shape_cast %118 : vector<512xf32> to vector<1x512xf32>
    %cst_61 = arith.constant 2.000000e+00 : f32
    %120 = vector.broadcast %cst_61 : f32 to vector<1x512xf32>
    %121 = arith.divf %119, %120 : vector<1x512xf32>
    %122 = vector.broadcast %121 : vector<1x512xf32> to vector<2x512xf32>
    %123 = arith.subf %117, %122 : vector<2x512xf32>
    %124 = arith.mulf %123, %123 : vector<2x512xf32>
    %cst_62 = arith.constant dense<0.000000e+00> : vector<512xf32>
    %125 = vector.multi_reduction <add>, %124, %cst_62 [0] : vector<2x512xf32> to vector<512xf32>
    %126 = vector.shape_cast %125 : vector<512xf32> to vector<1x512xf32>
    %cst_63 = arith.constant 2.000000e+00 : f32
    %127 = vector.broadcast %cst_63 : f32 to vector<1x512xf32>
    %128 = arith.divf %126, %127 : vector<1x512xf32>
    %129 = vector.broadcast %121 : vector<1x512xf32> to vector<2x512xf32>
    %130 = arith.subf %117, %129 : vector<2x512xf32>
    %cst_64 = arith.constant 8.000000e-01 : f32
    %131 = vector.broadcast %cst_64 : f32 to vector<1x512xf32>
    %132 = arith.addf %128, %131 : vector<1x512xf32>
    %133 = math.rsqrt %132 : vector<1x512xf32>
    %134 = vector.broadcast %133 : vector<1x512xf32> to vector<2x512xf32>
    %135 = arith.mulf %130, %134 : vector<2x512xf32>
    %c0_65 = arith.constant 0 : index
    %c0_66 = arith.constant 0 : index
    %136 = vector.load %arg17[%c0_65, %c0_66] : memref<1x512xf32, #tpu.memory_space<vmem>>, vector<1x512xf32>
    %137 = vector.broadcast %136 : vector<1x512xf32> to vector<2x512xf32>
    %138 = arith.mulf %135, %137 : vector<2x512xf32>
    %c0_67 = arith.constant 0 : index
    %c0_68 = arith.constant 0 : index
    %139 = vector.load %arg18[%c0_67, %c0_68] : memref<1x512xf32, #tpu.memory_space<vmem>>, vector<1x512xf32>
    %140 = vector.broadcast %139 : vector<1x512xf32> to vector<2x512xf32>
    %141 = arith.addf %138, %140 : vector<2x512xf32>
    %cst_69 = arith.constant 0.000000e+00 : f32
    %142 = vector.broadcast %cst_69 : f32 to vector<2x512xf32>
    %143 = arith.cmpf ogt, %141, %142 : vector<2x512xf32>
    %cst_70 = arith.constant 2.000000e-01 : f32
    %144 = vector.broadcast %cst_70 : f32 to vector<2x512xf32>
    %145 = arith.mulf %144, %141 : vector<2x512xf32>
    %146 = arith.select %143, %141, %145 : vector<2x512xi1>, vector<2x512xf32>
    %c0_71 = arith.constant 0 : index
    %c0_72 = arith.constant 0 : index
    %147 = vector.load %arg19[%c0_71, %c0_72] : memref<2x512xf32, #tpu.memory_space<vmem>>, vector<2x512xf32>
    tpu.vector_store %arg19[%c0_71, %c0_72], %146 {strides = array<i32>} : memref<2x512xf32, #tpu.memory_space<vmem>>, vector<2x512xf32>,
    return
  }
}

</mosaic_0001>

<bundles_post_ra>
// kernel: generator_forward.2
= control target key start
LH: loop header
LB: loop body
LE: loop exit
PB: predicated region body
PF: predicated region fallthrough
CT: control target
= control target key end

     0   :  { %s2479_s0 = inlined_call_operand.hbm [shape: f32[2,32], index: 0, kind: input, shape index: {}]   ;;  %s2480_s1 = inlined_call_operand.hbm [shape: f32[32,32], index: 1, kind: input, shape index: {}]   ;;  %s2481_s2 = inlined_call_operand.hbm [shape: f32[1,32], index: 2, kind: input, shape index: {}]   ;;  %s2482_s3 = inlined_call_operand.hbm [shape: f32[32,64], index: 3, kind: input, shape index: {}]   ;;  %s2483_s4 = inlined_call_operand.hbm [shape: f32[1,64], index: 4, kind: input, shape index: {}]   ;;  %s2484_s5 = inlined_call_operand.hbm [shape: f32[1,64], index: 5, kind: input, shape index: {}]   ;;  %s2485_s6 = inlined_call_operand.hbm [shape: f32[1,64], index: 6, kind: input, shape index: {}]   ;;  %s2486_s7 = inlined_call_operand.hbm [shape: f32[64,128], index: 7, kind: input, shape index: {}]   ;;  %s2487_s8 = inlined_call_operand.hbm [shape: f32[1,128], index: 8, kind: input, shape index: {}]   ;;  %s2488_s9 = inlined_call_operand.hbm [shape: f32[1,128], index: 9, kind: input, shape index: {}]   ;;  %s2489_s10 = inlined_call_operand.hbm [shape: f32[1,128], index: 10, kind: input, shape index: {}]   ;;  %s2490_s11 = inlined_call_operand.hbm [shape: f32[128,256], index: 11, kind: input, shape index: {}]   ;;  %s2491_s12 = inlined_call_operand.hbm [shape: f32[1,256], index: 12, kind: input, shape index: {}]   ;;  %s2492_s13 = inlined_call_operand.hbm [shape: f32[1,256], index: 13, kind: input, shape index: {}]   ;;  %s2493_s14 = inlined_call_operand.hbm [shape: f32[1,256], index: 14, kind: input, shape index: {}]   ;;  %s2494_s15 = inlined_call_operand.hbm [shape: f32[256,512], index: 15, kind: input, shape index: {}]   ;;  %s2495_s16 = inlined_call_operand.hbm [shape: f32[1,512], index: 16, kind: input, shape index: {}]   ;;  %s2496_s17 = inlined_call_operand.hbm [shape: f32[1,512], index: 17, kind: input, shape index: {}]   ;;  %s2497_s18 = inlined_call_operand.hbm [shape: f32[1,512], index: 18, kind: input, shape index: {}]   ;;  %s2498_s19 = inlined_call_operand.vmem [shape: f32[2,512], index: 19, kind: output, shape index: {}]  }
   0x1   :  { %2505 = sst [smem:[#allocation41_spill]] %s2479_s0 }
   0x2   :  { %2506 = sst [smem:[#allocation42_spill]] %s2480_s1 }
   0x3   :  { %2507 = sst [smem:[#allocation43_spill]] %s2481_s2 }
   0x4   :  { %2508 = sst [smem:[#allocation44_spill]] %s2482_s3 }
   0x5   :  { %2509 = sst [smem:[#allocation45_spill]] %s2495_s16 }
   0x6   :  { %2510 = sst [smem:[#allocation46_spill]] %s2497_s18 }
   0x7   :  { %2511 = sst [smem:[#allocation47_spill]] %s2498_s19 }
   0x8   :  { %24 = vsyncpa [#allocation3], 0 }
   0x9   :  { %25 = vsyncpa [#allocation5], 0 }
   0xa   :  { %26 = vsyncpa [#allocation8], 0 }
   0xb   :  { %27 = vsyncpa [#allocation11], 0 }
   0xc   :  { %28 = vsyncpa [#allocation14], 0 }
   0xd   :  { %29 = vsyncpa [#allocation17], 0 }
   0xe   :  { %30 = vsyncpa [#allocation20], 0 }
   0xf   :  { %31 = vsyncpa [#allocation23], 0 }
  0x10   :  { %32 = vsyncpa [#allocation26], 0 }
  0x11   :  { %33 = vsyncpa [#allocation29], 0  ;;  %s2041_s0 = smov [#allocation4]   ;;  %s2512_s1 = sld [smem:[#allocation42_spill]] }
  0x12   :  { %s49_s30 = sshll.u32 %s2041_s0, 4  ;;  %s50_s30 = int_to_ptr.vmem [resolvable:$true] %s49_s30 }
  0x17   :  { %s1603_s22 = scalar_lea.hbm %s2512_s1, 512 }
  0x18   :  { %p1604_p0 = scmp.ne.s32.totalorder %s2512_s1, %s1603_s22  ;;  %p1607_p1 = scmp.lt.u32.totalorder %s1603_s22, %s2512_s1 }
  0x1a   :  { %p1609_p2 = pnand %p1607_p1, %p1604_p0 }
  0x1c   :  { %1612 = shalt.err (!%p1609_p2)
}
  0x1d   :  { %s1613_s3 = scalar_lea.vmem %s50_s30, 512  ;;  %p1618_p4 = scmp.lt.s32.totalorder %s50_s30, %s50_s30 }
  0x1e   :  { %p1614_p3 = scmp.ne.s32.totalorder %s50_s30, %s1613_s3  ;;  %p1619_p5 = scmp.lt.s32.totalorder %s1613_s3, %s1613_s3 }
  0x20   :  { %p1620_p6 = por %p1619_p5, %p1618_p4 }
  0x22   :  { %p1621_p7 = pnand %p1620_p6, %p1614_p3 }
  0x24   :  { %1624 = shalt.err (!%p1621_p7)
}
  0x25   :  { %s2042_s26 = smov 128   ;;  %s2043_s27 = smov 8  }
  0x26   :  { %55 = dma.hbm_to_vmem [thread:$0]  %s2512_s1, 512, %s50_s30, [#allocation5], %s2042_s26, %s2042_s26, %s2043_s27  }
  0x27   :  { %s2044_s0 = smov [#allocation7]   ;;  %s2045_s21 = smov [#allocation10]  }
  0x28   :  { %s71_s20 = sshll.u32 %s2044_s0, 4  ;;  %s94_s22 = sshll.u32 %s2045_s21, 4  ;;  %s72_s20 = int_to_ptr.vmem [resolvable:$true] %s71_s20  ;;  %s95_s22 = int_to_ptr.vmem [resolvable:$true] %s94_s22 }
  0x29   :  { %s2513_s24 = sld [smem:[#allocation44_spill]] }
  0x2f   :  { %s1625_s25 = scalar_lea.hbm %s2513_s24, 512 }
  0x30   :  { %p1626_p8 = scmp.ne.s32.totalorder %s2513_s24, %s1625_s25  ;;  %p1629_p9 = scmp.lt.u32.totalorder %s1625_s25, %s2513_s24 }
  0x32   :  { %p1631_p10 = pnand %p1629_p9, %p1626_p8 }
  0x34   :  { %1634 = shalt.err (!%p1631_p10)
}
  0x35   :  { %s1635_s30 = scalar_lea.vmem %s72_s20, 512  ;;  %p1640_p12 = scmp.lt.s32.totalorder %s72_s20, %s72_s20 }
  0x36   :  { %p1636_p11 = scmp.ne.s32.totalorder %s72_s20, %s1635_s30  ;;  %p1641_p13 = scmp.lt.s32.totalorder %s1635_s30, %s1635_s30 }
  0x38   :  { %p1642_p0 = por %p1641_p13, %p1640_p12 }
  0x3a   :  { %p1643_p1 = pnand %p1642_p0, %p1636_p11 }
  0x3c   :  { %1646 = shalt.err (!%p1643_p1)
}
  0x3d   :  { %77 = dma.hbm_to_vmem [thread:$0]  %s2513_s24, 512, %s72_s20, [#allocation8], %s2042_s26, %s2042_s26, %s2043_s27  }
  0x3e   :  { %s1647_s18 = scalar_lea.hbm %s2484_s5, 16 }
  0x3f   :  { %p1648_p2 = scmp.ne.s32.totalorder %s2484_s5, %s1647_s18  ;;  %p1651_p3 = scmp.lt.u32.totalorder %s1647_s18, %s2484_s5 }
  0x41   :  { %p1653_p4 = pnand %p1651_p3, %p1648_p2 }
  0x43   :  { %1656 = shalt.err (!%p1653_p4)
}
  0x44   :  { %s1657_s23 = scalar_lea.vmem %s95_s22, 16  ;;  %s1661_s25 = scalar_lea.vmem %s95_s22, 32 }
  0x45   :  { %p1658_p5 = scmp.ne.s32.totalorder %s95_s22, %s1657_s23  ;;  %p1662_p6 = scmp.lt.s32.totalorder %s95_s22, %s95_s22 }
  0x46   :  { %p1663_p7 = scmp.lt.s32.totalorder %s1661_s25, %s1657_s23 }
  0x48   :  { %p1664_p8 = por %p1663_p7, %p1662_p6 }
  0x4a   :  { %p1665_p9 = pnand %p1664_p8, %p1658_p5 }
  0x4c   :  { %1668 = shalt.err (!%p1665_p9)
}
  0x4d   :  { %97 = dma.hbm_to_vmem [thread:$0]  %s2484_s5, 16, %s95_s22, [#allocation11]  }
  0x4e   :  { %s2046_s3 = smov [#allocation13]   ;;  %s2047_s1 = smov [#allocation16]  }
  0x4f   :  { %s113_s30 = sshll.u32 %s2046_s3, 4  ;;  %s136_s28 = sshll.u32 %s2047_s1, 4  ;;  %s114_s30 = int_to_ptr.vmem [resolvable:$true] %s113_s30  ;;  %s137_s28 = int_to_ptr.vmem [resolvable:$true] %s136_s28 }
  0x50   :  { %s1669_s18 = scalar_lea.hbm %s2486_s7, 1024 }
  0x51   :  { %p1670_p10 = scmp.ne.s32.totalorder %s2486_s7, %s1669_s18  ;;  %p1673_p11 = scmp.lt.u32.totalorder %s1669_s18, %s2486_s7 }
  0x53   :  { %p1675_p12 = pnand %p1673_p11, %p1670_p10 }
  0x55   :  { %1678 = shalt.err (!%p1675_p12)
}
  0x56   :  { %s1679_s5 = scalar_lea.vmem %s114_s30, 1024  ;;  %p1684_p0 = scmp.lt.s32.totalorder %s114_s30, %s114_s30 }
  0x57   :  { %p1680_p13 = scmp.ne.s32.totalorder %s114_s30, %s1679_s5  ;;  %p1685_p1 = scmp.lt.s32.totalorder %s1679_s5, %s1679_s5 }
  0x59   :  { %p1686_p2 = por %p1685_p1, %p1684_p0 }
  0x5b   :  { %p1687_p3 = pnand %p1686_p2, %p1680_p13 }
  0x5d   :  { %1690 = shalt.err (!%p1687_p3)
}
  0x5e   :  { %119 = dma.hbm_to_vmem [thread:$0]  %s2486_s7, 1024, %s114_s30, [#allocation14], %s2042_s26, %s2042_s26, %s2043_s27  }
  0x5f   :  { %s1691_s24 = scalar_lea.hbm %s2488_s9, 16 }
  0x60   :  { %p1692_p4 = scmp.ne.s32.totalorder %s2488_s9, %s1691_s24  ;;  %p1695_p5 = scmp.lt.u32.totalorder %s1691_s24, %s2488_s9 }
  0x62   :  { %p1697_p6 = pnand %p1695_p5, %p1692_p4 }
  0x64   :  { %1700 = shalt.err (!%p1697_p6)
}
  0x65   :  { %s1701_s18 = scalar_lea.vmem %s137_s28, 16  ;;  %s1705_s29 = scalar_lea.vmem %s137_s28, 32 }
  0x66   :  { %p1702_p7 = scmp.ne.s32.totalorder %s137_s28, %s1701_s18  ;;  %p1706_p8 = scmp.lt.s32.totalorder %s137_s28, %s137_s28 }
  0x67   :  { %p1707_p9 = scmp.lt.s32.totalorder %s1705_s29, %s1701_s18 }
  0x69   :  { %p1708_p10 = por %p1707_p9, %p1706_p8 }
  0x6b   :  { %p1709_p11 = pnand %p1708_p10, %p1702_p7 }
  0x6d   :  { %1712 = shalt.err (!%p1709_p11)
}
  0x6e   :  { %139 = dma.hbm_to_vmem [thread:$0]  %s2488_s9, 16, %s137_s28, [#allocation17]  }
  0x6f   :  { %s2048_s27 = smov [#allocation19]   ;;  %s1713_s2 = scalar_lea.hbm %s2490_s11, 4096 }
  0x70   :  { %s155_s30 = sshll.u32 %s2048_s27, 4  ;;  %p1714_p12 = scmp.ne.s32.totalorder %s2490_s11, %s1713_s2  ;;  %s156_s30 = int_to_ptr.vmem [resolvable:$true] %s155_s30 }
  0x71   :  { %p1717_p13 = scmp.lt.u32.totalorder %s1713_s2, %s2490_s11 }
  0x73   :  { %p1719_p0 = pnand %p1717_p13, %p1714_p12 }
  0x75   :  { %1722 = shalt.err (!%p1719_p0)
}
  0x76   :  { %s1723_s20 = scalar_lea.vmem %s156_s30, 4096  ;;  %p1728_p2 = scmp.lt.s32.totalorder %s156_s30, %s156_s30 }
  0x77   :  { %p1724_p1 = scmp.ne.s32.totalorder %s156_s30, %s1723_s20  ;;  %p1729_p3 = scmp.lt.s32.totalorder %s1723_s20, %s1723_s20 }
  0x79   :  { %p1730_p4 = por %p1729_p3, %p1728_p2 }
  0x7b   :  { %p1731_p5 = pnand %p1730_p4, %p1724_p1 }
  0x7d   :  { %1734 = shalt.err (!%p1731_p5)
}
  0x7e   :  { %s2049_s9 = smov 256   ;;  %s2050_s28 = smov 16  }
  0x7f   :  { %161 = dma.hbm_to_vmem [thread:$0]  %s2490_s11, 4096, %s156_s30, [#allocation20], %s2049_s9, %s2049_s9, %s2050_s28  }
  0x80   :  { %s2051_s1 = smov [#allocation22]   ;;  %s2052_s16 = smov [#allocation25]  }
  0x81   :  { %s178_s19 = sshll.u32 %s2051_s1, 4  ;;  %s197_s18 = sshll.u32 %s2052_s16, 4  ;;  %s179_s19 = int_to_ptr.vmem [resolvable:$true] %s178_s19  ;;  %s2251_s18 = int_to_ptr.vmem [resolvable:$true] %s197_s18 }
  0x82   :  { %s1735_s26 = scalar_lea.hbm %s2492_s13, 32 }
  0x83   :  { %p1736_p6 = scmp.ne.s32.totalorder %s2492_s13, %s1735_s26  ;;  %p1739_p7 = scmp.lt.u32.totalorder %s1735_s26, %s2492_s13 }
  0x85   :  { %p1741_p8 = pnand %p1739_p7, %p1736_p6 }
  0x87   :  { %1744 = shalt.err (!%p1741_p8)
}
  0x88   :  { %s1745_s11 = scalar_lea.vmem %s179_s19, 32  ;;  %p1750_p10 = scmp.lt.s32.totalorder %s179_s19, %s179_s19 }
  0x89   :  { %p1746_p9 = scmp.ne.s32.totalorder %s179_s19, %s1745_s11  ;;  %p1751_p11 = scmp.lt.s32.totalorder %s1745_s11, %s1745_s11 }
  0x8b   :  { %p1752_p12 = por %p1751_p11, %p1750_p10 }
  0x8d   :  { %p1753_p13 = pnand %p1752_p12, %p1746_p9 }
  0x8f   :  { %1756 = shalt.err (!%p1753_p13)
}
  0x90   :  { %181 = dma.hbm_to_vmem [thread:$0]  %s2492_s13, 32, %s179_s19, [#allocation23]  }
  0x91   :  { %s1757_s25 = scalar_lea.hbm %s2494_s15, 16384 }
  0x92   :  { %p1758_p0 = scmp.ne.s32.totalorder %s2494_s15, %s1757_s25  ;;  %p1761_p1 = scmp.lt.u32.totalorder %s1757_s25, %s2494_s15 }
  0x94   :  { %p1763_p2 = pnand %p1761_p1, %p1758_p0 }
  0x96   :  { %1766 = shalt.err (!%p1763_p2)
}
  0x97   :  { %s1767_s3 = scalar_lea.vmem %s2251_s18, 16384  ;;  %p1772_p4 = scmp.lt.s32.totalorder %s2251_s18, %s2251_s18 }
  0x98   :  { %p1768_p3 = scmp.ne.s32.totalorder %s2251_s18, %s1767_s3  ;;  %p1773_p5 = scmp.lt.s32.totalorder %s1767_s3, %s1767_s3 }
  0x9a   :  { %p1774_p6 = por %p1773_p5, %p1772_p4 }
  0x9c   :  { %p1775_p7 = pnand %p1774_p6, %p1768_p3 }
  0x9e   :  { %1778 = shalt.err (!%p1775_p7)
}
  0x9f   :  { %s2053_s13 = smov 512   ;;  %s2054_s1 = smov 32  }
  0xa0   :  { %203 = dma.hbm_to_vmem [thread:$0]  %s2494_s15, 16384, %s2251_s18, [#allocation26], %s2053_s13, %s2053_s13, %s2054_s1  }
  0xa1   :  { %s2055_s29 = smov [#allocation28]   ;;  %s2056_s26 = smov [#allocation2]  }
  0xa2   :  { %s220_s7 = sshll.u32 %s2055_s29, 4  ;;  %s40_s27 = sshll.u32 %s2056_s26, 4  ;;  %s221_s7 = int_to_ptr.vmem [resolvable:$true] %s220_s7  ;;  %s41_s27 = int_to_ptr.vmem [resolvable:$true] %s40_s27 }
  0xa3   :  { %s1779_s2 = scalar_lea.hbm %s2496_s17, 64 }
  0xa4   :  { %p1780_p8 = scmp.ne.s32.totalorder %s2496_s17, %s1779_s2  ;;  %p1783_p9 = scmp.lt.u32.totalorder %s1779_s2, %s2496_s17 }
  0xa6   :  { %p1785_p10 = pnand %p1783_p9, %p1780_p8 }
  0xa8   :  { %1788 = shalt.err (!%p1785_p10)
}
  0xa9   :  { %s1789_s15 = scalar_lea.vmem %s221_s7, 64  ;;  %p1794_p12 = scmp.lt.s32.totalorder %s221_s7, %s221_s7 }
  0xaa   :  { %p1790_p11 = scmp.ne.s32.totalorder %s221_s7, %s1789_s15  ;;  %p1795_p13 = scmp.lt.s32.totalorder %s1789_s15, %s1789_s15 }
  0xac   :  { %p1796_p0 = por %p1795_p13, %p1794_p12 }
  0xae   :  { %p1797_p1 = pnand %p1796_p0, %p1790_p11 }
  0xb0   :  { %1800 = shalt.err (!%p1797_p1)
}
  0xb1   :  { %223 = dma.hbm_to_vmem [thread:$0]  %s2496_s17, 64, %s221_s7, [#allocation29]  }
  0xb2   :  { %s2514_s9 = sld [smem:[#allocation41_spill]] }
  0xb8   :  { %s1801_s28 = scalar_lea.hbm %s2514_s9, 32 }
  0xb9   :  { %p1802_p2 = scmp.ne.s32.totalorder %s2514_s9, %s1801_s28  ;;  %p1805_p3 = scmp.lt.u32.totalorder %s1801_s28, %s2514_s9 }
  0xbb   :  { %p1807_p4 = pnand %p1805_p3, %p1802_p2 }
  0xbd   :  { %1810 = shalt.err (!%p1807_p4)
}
  0xbe   :  { %s1811_s19 = scalar_lea.vmem %s41_s27, 32  ;;  %p1816_p6 = scmp.lt.s32.totalorder %s41_s27, %s41_s27 }
  0xbf   :  { %p1812_p5 = scmp.ne.s32.totalorder %s41_s27, %s1811_s19  ;;  %p1817_p7 = scmp.lt.s32.totalorder %s1811_s19, %s1811_s19 }
  0xc1   :  { %p1818_p8 = por %p1817_p7, %p1816_p6 }
  0xc3   :  { %p1819_p9 = pnand %p1818_p8, %p1812_p5 }
  0xc5   :  { %1822 = shalt.err (!%p1819_p9)
}
  0xc6   :  { %43 = dma.hbm_to_vmem [thread:$0]  %s2514_s9, 32, %s41_s27, [#allocation3]  }
  0xc7   :  { %s2057_s29 = smov [#allocation6]   ;;  %s2058_s26 = smov [#allocation9]  }
  0xc8   :  { %s62_s7 = sshll.u32 %s2057_s29, 4  ;;  %s84_s0 = sshll.u32 %s2058_s26, 4  ;;  %s63_s7 = int_to_ptr.vmem [resolvable:$true] %s62_s7  ;;  %s85_s0 = int_to_ptr.vmem [resolvable:$true] %s84_s0 }
  0xc9   :  { %s2515_s11 = sld [smem:[#allocation43_spill]] }
  0xcf   :  { %s1823_s30 = scalar_lea.hbm %s2515_s11, 16 }
  0xd0   :  { %p1824_p10 = scmp.ne.s32.totalorder %s2515_s11, %s1823_s30  ;;  %p1827_p11 = scmp.lt.u32.totalorder %s1823_s30, %s2515_s11 }
  0xd2   :  { %p1829_p12 = pnand %p1827_p11, %p1824_p10 }
  0xd4   :  { %1832 = shalt.err (!%p1829_p12)
}
  0xd5   :  { %s1833_s27 = scalar_lea.vmem %s63_s7, 16  ;;  %s1837_s23 = scalar_lea.vmem %s63_s7, 32 }
  0xd6   :  { %p1834_p13 = scmp.ne.s32.totalorder %s63_s7, %s1833_s27  ;;  %p1838_p0 = scmp.lt.s32.totalorder %s63_s7, %s63_s7 }
  0xd7   :  { %p1839_p1 = scmp.lt.s32.totalorder %s1837_s23, %s1833_s27 }
  0xd9   :  { %p1840_p2 = por %p1839_p1, %p1838_p0 }
  0xdb   :  { %p1841_p3 = pnand %p1840_p2, %p1834_p13 }
  0xdd   :  { %1844 = shalt.err (!%p1841_p3)
}
  0xde   :  { %65 = dma.hbm_to_vmem [thread:$0]  %s2515_s11, 16, %s63_s7, [#allocation5]  }
  0xdf   :  { %s1845_s24 = scalar_lea.hbm %s2483_s4, 16 }
  0xe0   :  { %p1846_p4 = scmp.ne.s32.totalorder %s2483_s4, %s1845_s24  ;;  %p1849_p5 = scmp.lt.u32.totalorder %s1845_s24, %s2483_s4 }
  0xe2   :  { %p1851_p6 = pnand %p1849_p5, %p1846_p4 }
  0xe4   :  { %1854 = shalt.err (!%p1851_p6)
}
  0xe5   :  { %s1855_s17 = scalar_lea.vmem %s85_s0, 16  ;;  %s1859_s16 = scalar_lea.vmem %s85_s0, 32 }
  0xe6   :  { %p1856_p7 = scmp.ne.s32.totalorder %s85_s0, %s1855_s17  ;;  %p1860_p8 = scmp.lt.s32.totalorder %s85_s0, %s85_s0 }
  0xe7   :  { %p1861_p9 = scmp.lt.s32.totalorder %s1859_s16, %s1855_s17 }
  0xe9   :  { %p1862_p10 = por %p1861_p9, %p1860_p8 }
  0xeb   :  { %p1863_p11 = pnand %p1862_p10, %p1856_p7 }
  0xed   :  { %1866 = shalt.err (!%p1863_p11)
}
  0xee   :  { %87 = dma.hbm_to_vmem [thread:$0]  %s2483_s4, 16, %s85_s0, [#allocation8]  }
  0xef   :  { %s2059_s26 = smov [#allocation12]   ;;  %s2060_s2 = smov [#allocation15]  }
  0xf0   :  { %s104_s21 = sshll.u32 %s2059_s26, 4  ;;  %s126_s11 = sshll.u32 %s2060_s2, 4  ;;  %s105_s21 = int_to_ptr.vmem [resolvable:$true] %s104_s21  ;;  %s127_s11 = int_to_ptr.vmem [resolvable:$true] %s126_s11 }
  0xf1   :  { %s1867_s22 = scalar_lea.hbm %s2485_s6, 16 }
  0xf2   :  { %p1868_p12 = scmp.ne.s32.totalorder %s2485_s6, %s1867_s22  ;;  %p1871_p13 = scmp.lt.u32.totalorder %s1867_s22, %s2485_s6 }
  0xf4   :  { %p1873_p0 = pnand %p1871_p13, %p1868_p12 }
  0xf6   :  { %1876 = shalt.err (!%p1873_p0)
}
  0xf7   :  { %s1877_s4 = scalar_lea.vmem %s105_s21, 16  ;;  %s1881_s0 = scalar_lea.vmem %s105_s21, 32 }
  0xf8   :  { %p1878_p1 = scmp.ne.s32.totalorder %s105_s21, %s1877_s4  ;;  %p1882_p2 = scmp.lt.s32.totalorder %s105_s21, %s105_s21 }
  0xf9   :  { %p1883_p3 = scmp.lt.s32.totalorder %s1881_s0, %s1877_s4 }
  0xfb   :  { %p1884_p4 = por %p1883_p3, %p1882_p2 }
  0xfd   :  { %p1885_p5 = pnand %p1884_p4, %p1878_p1 }
  0xff   :  { %1888 = shalt.err (!%p1885_p5)
}
 0x100   :  { %107 = dma.hbm_to_vmem [thread:$0]  %s2485_s6, 16, %s105_s21, [#allocation11]  }
 0x101   :  { %s1889_s24 = scalar_lea.hbm %s2487_s8, 16 }
 0x102   :  { %p1890_p6 = scmp.ne.s32.totalorder %s2487_s8, %s1889_s24  ;;  %p1893_p7 = scmp.lt.u32.totalorder %s1889_s24, %s2487_s8 }
 0x104   :  { %p1895_p8 = pnand %p1893_p7, %p1890_p6 }
 0x106   :  { %1898 = shalt.err (!%p1895_p8)
}
 0x107   :  { %s1899_s17 = scalar_lea.vmem %s127_s11, 16  ;;  %s1903_s16 = scalar_lea.vmem %s127_s11, 32 }
 0x108   :  { %p1900_p9 = scmp.ne.s32.totalorder %s127_s11, %s1899_s17  ;;  %p1904_p10 = scmp.lt.s32.totalorder %s127_s11, %s127_s11 }
 0x109   :  { %p1905_p11 = scmp.lt.s32.totalorder %s1903_s16, %s1899_s17 }
 0x10b   :  { %p1906_p12 = por %p1905_p11, %p1904_p10 }
 0x10d   :  { %p1907_p13 = pnand %p1906_p12, %p1900_p9 }
 0x10f   :  { %1910 = shalt.err (!%p1907_p13)
}
 0x110   :  { %129 = dma.hbm_to_vmem [thread:$0]  %s2487_s8, 16, %s127_s11, [#allocation14]  }
 0x111   :  { %s2061_s7 = smov [#allocation18]   ;;  %s2062_s21 = smov [#allocation21]  }
 0x112   :  { %s146_s26 = sshll.u32 %s2061_s7, 4  ;;  %s168_s2 = sshll.u32 %s2062_s21, 4  ;;  %s147_s26 = int_to_ptr.vmem [resolvable:$true] %s146_s26  ;;  %s169_s2 = int_to_ptr.vmem [resolvable:$true] %s168_s2 }
 0x113   :  { %s1911_s22 = scalar_lea.hbm %s2489_s10, 16 }
 0x114   :  { %p1912_p0 = scmp.ne.s32.totalorder %s2489_s10, %s1911_s22  ;;  %p1915_p1 = scmp.lt.u32.totalorder %s1911_s22, %s2489_s10 }
 0x116   :  { %p1917_p2 = pnand %p1915_p1, %p1912_p0 }
 0x118   :  { %1920 = shalt.err (!%p1917_p2)
}
 0x119   :  { %s1921_s8 = scalar_lea.vmem %s147_s26, 16  ;;  %s1925_s11 = scalar_lea.vmem %s147_s26, 32 }
 0x11a   :  { %p1922_p3 = scmp.ne.s32.totalorder %s147_s26, %s1921_s8  ;;  %p1926_p4 = scmp.lt.s32.totalorder %s147_s26, %s147_s26 }
 0x11b   :  { %p1927_p5 = scmp.lt.s32.totalorder %s1925_s11, %s1921_s8 }
 0x11d   :  { %p1928_p6 = por %p1927_p5, %p1926_p4 }
 0x11f   :  { %p1929_p7 = pnand %p1928_p6, %p1922_p3 }
 0x121   :  { %1932 = shalt.err (!%p1929_p7)
}
 0x122   :  { %149 = dma.hbm_to_vmem [thread:$0]  %s2489_s10, 16, %s147_s26, [#allocation17]  }
 0x123   :  { %s1933_s9 = scalar_lea.hbm %s2491_s12, 32 }
 0x124   :  { %p1934_p8 = scmp.ne.s32.totalorder %s2491_s12, %s1933_s9  ;;  %p1937_p9 = scmp.lt.u32.totalorder %s1933_s9, %s2491_s12 }
 0x126   :  { %p1939_p10 = pnand %p1937_p9, %p1934_p8 }
 0x128   :  { %1942 = shalt.err (!%p1939_p10)
}
 0x129   :  { %s1943_s1 = scalar_lea.vmem %s169_s2, 32  ;;  %p1948_p12 = scmp.lt.s32.totalorder %s169_s2, %s169_s2 }
 0x12a   :  { %p1944_p11 = scmp.ne.s32.totalorder %s169_s2, %s1943_s1  ;;  %p1949_p13 = scmp.lt.s32.totalorder %s1943_s1, %s1943_s1 }
 0x12c   :  { %p1950_p0 = por %p1949_p13, %p1948_p12 }
 0x12e   :  { %p1951_p1 = pnand %p1950_p0, %p1944_p11 }
 0x130   :  { %1954 = shalt.err (!%p1951_p1)
}
 0x131   :  { %171 = dma.hbm_to_vmem [thread:$0]  %s2491_s12, 32, %s169_s2, [#allocation20]  }
 0x132   :  { %s2063_s17 = smov [#allocation24]   ;;  %s2064_s6 = smov [#allocation27]  }
 0x133   :  { %s188_s16 = sshll.u32 %s2063_s17, 4  ;;  %s210_s29 = sshll.u32 %s2064_s6, 4  ;;  %s189_s16 = int_to_ptr.vmem [resolvable:$true] %s188_s16  ;;  %s211_s29 = int_to_ptr.vmem [resolvable:$true] %s210_s29 }
 0x134   :  { %s1955_s21 = scalar_lea.hbm %s2493_s14, 32 }
 0x135   :  { %p1956_p2 = scmp.ne.s32.totalorder %s2493_s14, %s1955_s21  ;;  %p1959_p3 = scmp.lt.u32.totalorder %s1955_s21, %s2493_s14 }
 0x137   :  { %p1961_p4 = pnand %p1959_p3, %p1956_p2 }
 0x139   :  { %1964 = shalt.err (!%p1961_p4)
}
 0x13a   :  { %s1965_s12 = scalar_lea.vmem %s189_s16, 32  ;;  %p1970_p6 = scmp.lt.s32.totalorder %s189_s16, %s189_s16 }
 0x13b   :  { %p1966_p5 = scmp.ne.s32.totalorder %s189_s16, %s1965_s12  ;;  %p1971_p7 = scmp.lt.s32.totalorder %s1965_s12, %s1965_s12 }
 0x13d   :  { %p1972_p8 = por %p1971_p7, %p1970_p6 }
 0x13f   :  { %p1973_p9 = pnand %p1972_p8, %p1966_p5 }
 0x141   :  { %1976 = shalt.err (!%p1973_p9)
}
 0x142   :  { %191 = dma.hbm_to_vmem [thread:$0]  %s2493_s14, 32, %s189_s16, [#allocation23]  }
 0x143   :  { %s2516_s8 = sld [smem:[#allocation45_spill]] }
 0x149   :  { %s1977_s11 = scalar_lea.hbm %s2516_s8, 64 }
 0x14a   :  { %p1978_p10 = scmp.ne.s32.totalorder %s2516_s8, %s1977_s11  ;;  %p1981_p11 = scmp.lt.u32.totalorder %s1977_s11, %s2516_s8 }
 0x14c   :  { %p1983_p12 = pnand %p1981_p11, %p1978_p10 }
 0x14e   :  { %1986 = shalt.err (!%p1983_p12)
}
 0x14f   :  { %s1987_s9 = scalar_lea.vmem %s211_s29, 64  ;;  %p1992_p0 = scmp.lt.s32.totalorder %s211_s29, %s211_s29 }
 0x150   :  { %p1988_p13 = scmp.ne.s32.totalorder %s211_s29, %s1987_s9  ;;  %p1993_p1 = scmp.lt.s32.totalorder %s1987_s9, %s1987_s9 }
 0x152   :  { %p1994_p2 = por %p1993_p1, %p1992_p0 }
 0x154   :  { %p1995_p3 = pnand %p1994_p2, %p1988_p13 }
 0x156   :  { %1998 = shalt.err (!%p1995_p3)
}
 0x157   :  { %213 = dma.hbm_to_vmem [thread:$0]  %s2516_s8, 64, %s211_s29, [#allocation26]  }
 0x158   :  { %s2065_s24 = smov [#allocation30]   ;;  %s2517_s10 = sld [smem:[#allocation46_spill]] }
 0x159   :  { %s230_s3 = sshll.u32 %s2065_s24, 4  ;;  %s231_s3 = int_to_ptr.vmem [resolvable:$true] %s230_s3 }
 0x15e   :  { %s1999_s19 = scalar_lea.hbm %s2517_s10, 64 }
 0x15f   :  { %p2000_p4 = scmp.ne.s32.totalorder %s2517_s10, %s1999_s19  ;;  %p2003_p5 = scmp.lt.u32.totalorder %s1999_s19, %s2517_s10 }
 0x161   :  { %p2005_p6 = pnand %p2003_p5, %p2000_p4 }
 0x163   :  { %2008 = shalt.err (!%p2005_p6)
}
 0x164   :  { %s2009_s26 = scalar_lea.vmem %s231_s3, 64  ;;  %p2014_p8 = scmp.lt.s32.totalorder %s231_s3, %s231_s3 }
 0x165   :  { %p2010_p7 = scmp.ne.s32.totalorder %s231_s3, %s2009_s26  ;;  %p2015_p9 = scmp.lt.s32.totalorder %s2009_s26, %s2009_s26 }
 0x167   :  { %p2016_p10 = por %p2015_p9, %p2014_p8 }
 0x169   :  { %p2017_p11 = pnand %p2016_p10, %p2010_p7 }
 0x16b   :  { %2020 = shalt.err (!%p2017_p11)
}
 0x16c   :  { %233 = dma.hbm_to_vmem [thread:$0]  %s2517_s10, 64, %s231_s3, [#allocation29]  }
 0x16d   :  { %2021 = dma.done.wait [#allocation3], 32  }
 0x16e   :  { %2022 = vsyncadd [#allocation3], 4294967264 }
 0x16f   :  { %2023 = dma.done.wait [#allocation5], 528  }
 0x170   :  { %2024 = vsyncadd [#allocation5], 4294966768 }
 0x171   :  { %2025 = dma.done.wait [#allocation8], 528  }
 0x172   :  { %2026 = vsyncadd [#allocation8], 4294966768 }
 0x173   :  { %2027 = dma.done.wait [#allocation11], 32  }
 0x174   :  { %2028 = vsyncadd [#allocation11], 4294967264 }
 0x175   :  { %2029 = dma.done.wait [#allocation14], 1040  }
 0x176   :  { %2030 = vsyncadd [#allocation14], 4294966256 }
 0x177   :  { %2031 = dma.done.wait [#allocation17], 32  }
 0x178   :  { %2032 = vsyncadd [#allocation17], 4294967264 }
 0x179   :  { %2033 = dma.done.wait [#allocation20], 4128  }
 0x17a   :  { %2034 = vsyncadd [#allocation20], 4294963168 }
 0x17b   :  { %2035 = dma.done.wait [#allocation23], 64  }
 0x17c   :  { %2036 = vsyncadd [#allocation23], 4294967232 }
 0x17d   :  { %2037 = dma.done.wait [#allocation26], 16448  }
 0x17e   :  { %2038 = vsyncadd [#allocation26], 4294950848 }
 0x17f   :  { %2039 = dma.done.wait [#allocation29], 128  }
 0x180   :  { %2040 = vsyncadd [#allocation29], 4294967168  ;;  %v2066_v0 = vmov 0.0|0.0   ;;  %vm2067_vm0 = vmmov 0   ;;  %v2068_v1 = vmov 0.0   ;;  %v292_v2 = vld [vmem:[#allocation4] sm:$0xff] }
 0x181   :  { %1374 = vmatprep.subr.bf16.mxu0 %v2066_v0  ;;  %1341 = vmatprep.mubr.msk.f32.mxu0 %vm2067_vm0, %v2068_v1  ;;  %v293_v3 = vld [vmem:[#allocation4 + $0x8] sm:$0xff]  ;;  %v294_v4 = vld [vmem:[#allocation4 + $0x10] sm:$0xff]  ;;  %v295_v6 = vld [vmem:[#allocation4 + $0x18] sm:$0xff]  ;;  %vm303_vm1 = vcmask 261120   ;;  %vm464_vm3 = vcmask 517120   ;;  %vm521_vm5 = vcmask 523264  }
 0x182   :  { %744 = vmatprep.mubr.f32.mxu1 %v2068_v1  ;;  %v1375_v5 = vpack.c.bf16 %v293_v3, %v292_v2  ;;  %v1378_v7 = vpack.c.bf16 %v295_v6, %v294_v4  ;;  %v380_v8 = vld [vmem:[#allocation7] sm:$0xff]  ;;  %v381_v9 = vld [vmem:[#allocation7 + $0x8] sm:$0xff]  ;;  %v291_v10 = vld [vmem:[#allocation2] sm:$0x3]  ;;  %vm595_vm6 = vcmask 1041408   ;;  %s2518_s22 = sld [smem:[#allocation47_spill]] }
 0x183   :  { %v1381_v11 = vpack.c.bf16 %v381_v9, %v380_v8  ;;  %v382_v12 = vld [vmem:[#allocation7 + $0x10] sm:$0xff]  ;;  %v383_v13 = vld [vmem:[#allocation7 + $0x18] sm:$0xff]  ;;  %v506_v21 = vld [vmem:[#allocation13] sm:$0xff] }
 0x184   :  { %1376 = vmatpush3.bf16.msra.mxu0 %v1375_v5  ;;  %v1384_v14 = vpack.c.bf16 %v383_v13, %v382_v12  ;;  %v1304_v15 = vld [vmem:[#allocation6] ss:$0 sm:$0xff]  ;;  %v507_v22 = vld [vmem:[#allocation13 + $0x8] sm:$0xff]  ;;  %v508_v24 = vld [vmem:[#allocation13 + $0x10] sm:$0xff] }
 0x185   :  { %1377 = vmatprep.subr.bf16.mxu0 %v2066_v0  ;;  %v1387_v23 = vpack.c.bf16 %v507_v22, %v506_v21  ;;  %v509_v25 = vld [vmem:[#allocation13 + $0x18] sm:$0xff]  ;;  %v510_v27 = vld [vmem:[#allocation13 + $0x20] sm:$0xff]  ;;  %v511_v28 = vld [vmem:[#allocation13 + $0x28] sm:$0xff] }
 0x186   :  { %v1390_v26 = vpack.c.bf16 %v509_v25, %v508_v24  ;;  %v1393_v29 = vpack.c.bf16 %v511_v28, %v510_v27  ;;  %v512_v30 = vld [vmem:[#allocation13 + $0x30] sm:$0xff]  ;;  %v513_v31 = vld [vmem:[#allocation13 + $0x38] sm:$0xff]  ;;  %v636_v3 = vld [vmem:[#allocation19] sm:$0xff] }
 0x187   :  { %v1396_v32 = vpack.c.bf16 %v513_v31, %v512_v30  ;;  %v1306_v33 = vld [vmem:[#allocation9] ss:$0 sm:$0xff]  ;;  %v1308_v57 = vld [vmem:[#allocation10] ss:$0 sm:$0xff]  ;;  %v1309_v59 = vld [vmem:[#allocation12] ss:$0 sm:$0xff] }
 0x188   :  { %1379 = vmatpush3.bf16.msra.mxu0 %v1378_v7  ;;  %v638_v4 = vld [vmem:[#allocation19 + $0x10] sm:$0xff]  ;;  %v641_v6 = vld [vmem:[#allocation19 + $0x28] sm:$0xff]  ;;  %v643_v7 = vld [vmem:[#allocation19 + $0x38] sm:$0xff] }
 0x189   :  { %1380 = vmatprep.subr.bf16.mxu0 %v2066_v0  ;;  %v1400_v5 = vpack.c.bf16 %v638_v4, %v636_v3  ;;  %v1402_v8 = vpack.c.bf16 %v643_v7, %v641_v6  ;;  %v640_v9 = vld [vmem:[#allocation19 + $0x20] sm:$0xff]  ;;  %v645_v12 = vld [vmem:[#allocation19 + $0x48] sm:$0xff]  ;;  %v647_v13 = vld [vmem:[#allocation19 + $0x58] sm:$0xff] }
 0x18a   :  { %v648_v21 = vld [vmem:[#allocation19 + $0x60] sm:$0xff]  ;;  %v650_v22 = vld [vmem:[#allocation19 + $0x70] sm:$0xff]  ;;  %v653_v24 = vld [vmem:[#allocation19 + $0x88] sm:$0xff] }
 0x18b   :  { %1342 = vmatmul.mubr.msk.f32.vlgmr.msra.gmra.mrb[0].mxu0 %vm303_vm1, %v291_v10  ;;  %v642_v10 = vld [vmem:[#allocation19 + $0x30] sm:$0xff]  ;;  %v655_v25 = vld [vmem:[#allocation19 + $0x98] sm:$0xff]  ;;  %v652_v27 = vld [vmem:[#allocation19 + $0x80] sm:$0xff] }
 0x18c   :  { %1382 = vmatpush3.bf16.msra.mxu0 %v1381_v11  ;;  %1352 = vmatprep.mubr.msk.f32.mxu0 %vm2067_vm0, %v2068_v1  ;;  %v1404_v11 = vpack.c.bf16 %v642_v10, %v640_v9  ;;  %v654_v28 = vld [vmem:[#allocation19 + $0x90] sm:$0xff]  ;;  %v657_v30 = vld [vmem:[#allocation19 + $0xa8] sm:$0xff]  ;;  %v659_v31 = vld [vmem:[#allocation19 + $0xb8] sm:$0xff] }
 0x18d   :  { %1383 = vmatprep.subr.bf16.mxu0 %v2066_v0 }
 0x190   :  { %1385 = vmatpush3.bf16.msra.mxu0 %v1384_v14  ;;  %v1406_v14 = vpack.c.bf16 %v647_v13, %v645_v12 }
 0x191   :  { %1386 = vmatprep.subr.bf16.mxu0 %v2066_v0 }
 0x25e   :  { %v373_v16 = vpop.f32.mrb[0].mxu0 }
 0x25f   :  { %v374_v17 = vadd.f32 %v1304_v15, %v373_v16  ;;  %v1343_v18 = vpop.f32.mrb[1].mxu0  ;;  %v644_v15 = vld [vmem:[#allocation19 + $0x40] sm:$0xff]  ;;  %v646_v16 = vld [vmem:[#allocation19 + $0x50] sm:$0xff] }
 0x260   :  { %v649_v18 = vld [vmem:[#allocation19 + $0x68] sm:$0xff] }
 0x261   :  { %vm377_vm2 = vcmp.gt.f32.partialorder %v374_v17, 0.0  ;;  %v378_v19 = vmul.f32 0.2, %v374_v17 }
 0x263   :  { %v379_v20 = vsel %vm377_vm2, %v374_v17, %v378_v19  ;;  %v1408_v17 = vpack.c.bf16 %v646_v16, %v644_v15  ;;  %v651_v19 = vld [vmem:[#allocation19 + $0x78] sm:$0xff] }
 0x264   :  { %1353 = vmatmul.mubr.msk.f32.vlgmr.msra.gmra.mrb[2].mxu0 %vm303_vm1, %v379_v20  ;;  %v1410_v20 = vpack.c.bf16 %v651_v19, %v649_v18  ;;  %v1313_v19 = vld [vmem:[#allocation18] ss:$0 sm:$0xff] }
 0x265   :  { %1371 = vmatprep.mubr.msk.f32.mxu0 %vm2067_vm0, %v2068_v1  ;;  %1388 = vmatpush3.bf16.msra.mxu0 %v1387_v23  ;;  %v639_v1 = vld [vmem:[#allocation19 + $0x18] sm:$0xff]  ;;  %v1412_v23 = vpack.c.bf16 %v650_v22, %v648_v21 }
 0x266   :  { %1389 = vmatprep.subr.bf16.mxu0 %v2066_v0  ;;  %v829_v21 = vld [vmem:[#allocation25 + $0x10] sm:$0xff] }
 0x267   :  { %v833_v22 = vld [vmem:[#allocation25 + $0x30] sm:$0xff] }
 0x269   :  { %1391 = vmatpush3.bf16.msra.mxu0 %v1390_v26  ;;  %v1414_v26 = vpack.c.bf16 %v655_v25, %v653_v24  ;;  %v1496_v25 = vpack.c.bf16 %v833_v22, %v829_v21  ;;  %v873_v21 = vld [vmem:[#allocation25 + $0x170] sm:$0xff] }
 0x26a   :  { %1392 = vmatprep.subr.bf16.mxu0 %v2066_v0 }
 0x26d   :  { %1394 = vmatpush3.bf16.msra.mxu0 %v1393_v29  ;;  %v1416_v29 = vpack.c.bf16 %v654_v28, %v652_v27  ;;  %v836_v27 = vld [vmem:[#allocation25 + $0x48] sm:$0xff] }
 0x26e   :  { %1395 = vmatprep.subr.bf16.mxu0 %v2066_v0  ;;  %v637_v0 = vld [vmem:[#allocation19 + $0x8] sm:$0xff] }
 0x26f   :  { %v1398_v2 = vpack.c.bf16 %v639_v1, %v637_v0  ;;  %v840_v28 = vld [vmem:[#allocation25 + $0x68] sm:$0xff] }
 0x271   :  { %1397 = vmatpush3.bf16.msra.mxu0 %v1396_v32  ;;  %1399 = vmatprep.subr.bf16.mxu1 %v1398_v2  ;;  %v1418_v32 = vpack.c.bf16 %v659_v31, %v657_v30  ;;  %v1434_v30 = vpack.c.bf16 %v840_v28, %v836_v27  ;;  %v842_v31 = vld [vmem:[#allocation25 + $0x78] sm:$0xff]  ;;  %v875_v28 = vld [vmem:[#allocation25 + $0x180] sm:$0xff] }
 0x272   :  { %1401 = vmatpush1.bf16.msra.mxu1 %v1400_v5  ;;  %v882_v27 = vld [vmem:[#allocation25 + $0x1b8] sm:$0xff] }
 0x273   :  { %1403 = vmatprep.subr.bf16.mxu1 %v1402_v8 }
 0x276   :  { %1405 = vmatpush1.bf16.msra.mxu1 %v1404_v11 }
 0x277   :  { %1407 = vmatprep.subr.bf16.mxu1 %v1406_v14 }
 0x27a   :  { %1409 = vmatpush1.bf16.msra.mxu1 %v1408_v17  ;;  %v1312_v17 = vld [vmem:[#allocation16] ss:$0 sm:$0xff] }
 0x27b   :  { %1411 = vmatprep.subr.bf16.mxu1 %v1410_v20 }
 0x27e   :  { %1413 = vmatpush1.bf16.msra.mxu1 %v1412_v23 }
 0x27f   :  { %1415 = vmatprep.subr.bf16.mxu1 %v1414_v26 }
 0x282   :  { %1417 = vmatpush1.bf16.msra.mxu1 %v1416_v29  ;;  %v838_v29 = vld [vmem:[#allocation25 + $0x58] sm:$0xff] }
 0x283   :  { %1419 = vmatprep.subr.bf16.mxu1 %v1418_v32  ;;  %v835_v32 = vld [vmem:[#allocation25 + $0x40] sm:$0xff] }
 0x337   :  { %v460_v34 = vpop.f32.mrb[2].mxu0 }
 0x338   :  { %v461_v35 = vadd.f32 %v1306_v33, %v460_v34  ;;  %v1354_v36 = vpop.f32.mrb[3].mxu0  ;;  %v656_v33 = vld [vmem:[#allocation19 + $0xa0] sm:$0xff]  ;;  %v658_v34 = vld [vmem:[#allocation19 + $0xb0] sm:$0xff] }
 0x339   :  { %v661_v36 = vld [vmem:[#allocation19 + $0xc8] sm:$0xff] }
 0x33a   :  { %v465_v37 = vsel %vm464_vm3, %v461_v35, 0.0 }
 0x33b   :  { %v466_v38 = vrot.slane %v465_v37, 4 }
 0x33d   :  { %v467_v39 = vadd.f32 %v466_v38, %v465_v37  ;;  %v663_v37 = vld [vmem:[#allocation19 + $0xd8] sm:$0xff] }
 0x33e   :  { %v1422_v38 = vpack.c.bf16 %v663_v37, %v661_v36  ;;  %v837_v36 = vld [vmem:[#allocation25 + $0x50] sm:$0xff] }
 0x33f   :  { %v468_v40 = vrot.slane %v467_v39, 2  ;;  %v841_v37 = vld [vmem:[#allocation25 + $0x70] sm:$0xff] }
 0x341   :  { %v469_v41 = vadd.f32 %v468_v40, %v467_v39  ;;  %v660_v39 = vld [vmem:[#allocation19 + $0xc0] sm:$0xff]  ;;  %v662_v40 = vld [vmem:[#allocation19 + $0xd0] sm:$0xff] }
 0x343   :  { %v470_v42 = vrot.slane %v469_v41, 1 }
 0x345   :  { %v471_v43 = vadd.f32 %v470_v42, %v469_v41  ;;  %v1424_v41 = vpack.c.bf16 %v662_v40, %v660_v39  ;;  %v665_v42 = vld [vmem:[#allocation19 + $0xe8] sm:$0xff] }
 0x346   :  { %v844_v39 = vld [vmem:[#allocation25 + $0x88] sm:$0xff] }
 0x347   :  { %v473_v44 = vmul.f32 0.5, %v471_v43  ;;  %v667_v43 = vld [vmem:[#allocation19 + $0xf8] sm:$0xff]  ;;  %v848_v40 = vld [vmem:[#allocation25 + $0xa8] sm:$0xff] }
 0x349   :  { %v474_v45 = vsub.f32 %v461_v35, %v473_v44  ;;  %v1420_v35 = vpack.c.bf16 %v658_v34, %v656_v33  ;;  %v664_v44 = vld [vmem:[#allocation19 + $0xe0] sm:$0xff]  ;;  %v1498_v34 = vpack.c.bf16 %v842_v31, %v838_v29 }
 0x34a   :  { %v839_v33 = vld [vmem:[#allocation25 + $0x60] sm:$0xff] }
 0x34b   :  { %v475_v46 = vmul.f32 %v474_v45, %v474_v45  ;;  %1421 = vmatpush1.bf16.msra.mxu1 %v1420_v35  ;;  %v1436_v35 = vpack.c.bf16 %v839_v33, %v835_v32  ;;  %v879_v29 = vld [vmem:[#allocation25 + $0x1a0] sm:$0xff]  ;;  %v877_v32 = vld [vmem:[#allocation25 + $0x190] sm:$0xff] }
 0x34c   :  { %1423 = vmatprep.subr.bf16.mxu1 %v1422_v38  ;;  %v1500_v38 = vpack.c.bf16 %v841_v37, %v837_v36  ;;  %v1456_v31 = vpack.c.bf16 %v879_v29, %v875_v28  ;;  %v881_v33 = vld [vmem:[#allocation25 + $0x1b0] sm:$0xff]  ;;  %v888_v36 = vld [vmem:[#allocation25 + $0x1e8] sm:$0xff]  ;;  %v886_v37 = vld [vmem:[#allocation25 + $0x1d8] sm:$0xff] }
 0x34d   :  { %v476_v47 = vsel %vm464_vm3, %v475_v46, 0.0  ;;  %v666_v46 = vld [vmem:[#allocation19 + $0xf0] sm:$0xff] }
 0x34e   :  { %v477_v48 = vrot.slane %v476_v47, 4  ;;  %v917_v28 = vld [vmem:[#allocation25 + $0x2d0] sm:$0xff] }
 0x34f   :  { %1425 = vmatpush1.bf16.msra.mxu1 %v1424_v41  ;;  %v846_v41 = vld [vmem:[#allocation25 + $0x98] sm:$0xff]  ;;  %v921_v29 = vld [vmem:[#allocation25 + $0x2f0] sm:$0xff] }
 0x350   :  { %v478_v49 = vadd.f32 %v477_v48, %v476_v47  ;;  %v1428_v47 = vpack.c.bf16 %v666_v46, %v664_v44  ;;  %v828_v48 = vld [vmem:[#allocation25 + $0x8] sm:$0xff]  ;;  %v843_v44 = vld [vmem:[#allocation25 + $0x80] sm:$0xff] }
 0x352   :  { %v479_v50 = vrot.slane %v478_v49, 2 }
 0x354   :  { %v480_v51 = vadd.f32 %v479_v50, %v478_v49  ;;  %v832_v49 = vld [vmem:[#allocation25 + $0x28] sm:$0xff]  ;;  %v830_v50 = vld [vmem:[#allocation25 + $0x18] sm:$0xff] }
 0x356   :  { %v481_v52 = vrot.slane %v480_v51, 1 }
 0x358   :  { %v482_v53 = vadd.f32 %v481_v52, %v480_v51  ;;  %v1430_v51 = vpack.c.bf16 %v832_v49, %v828_v48  ;;  %v834_v52 = vld [vmem:[#allocation25 + $0x38] sm:$0xff]  ;;  %v845_v48 = vld [vmem:[#allocation25 + $0x90] sm:$0xff] }
 0x359   :  { %v849_v49 = vld [vmem:[#allocation25 + $0xb0] sm:$0xff] }
 0x35a   :  { %v483_v54 = vmul.f32 0.5, %v482_v53  ;;  %v827_v53 = vld [vmem:[#allocation25] sm:$0xff]  ;;  %1431 = vmatprep.subr.bf16.mxu0 %v1430_v51  ;;  %v852_v51 = vld [vmem:[#allocation25 + $0xc8] sm:$0xff] }
 0x35c   :  { %v484_v55 = vadd.f32 0.8, %v483_v54  ;;  %v831_v54 = vld [vmem:[#allocation25 + $0x20] sm:$0xff] }
 0x35e   :  { %1587 = vrsqrt.f32 %v484_v55  ;;  %v1494_v55 = vpack.c.bf16 %v834_v52, %v830_v50  ;;  %v1504_v50 = vpack.c.bf16 %v849_v49, %v845_v48  ;;  %v856_v52 = vld [vmem:[#allocation25 + $0xe8] sm:$0xff]  ;;  %v894_v49 = vld [vmem:[#allocation25 + $0x218] sm:$0xff] }
 0x35f   :  { %v896_v48 = vld [vmem:[#allocation25 + $0x228] sm:$0xff] }
 0x368   :  { %v1588_v56 = vpop.eup %1587 }
 0x369   :  { %v486_v58 = vmul.f32 %v1588_v56, %v474_v45  ;;  %v1426_v45 = vpack.c.bf16 %v667_v43, %v665_v42  ;;  %v1432_v56 = vpack.c.bf16 %v831_v54, %v827_v53  ;;  %v1438_v42 = vpack.c.bf16 %v848_v40, %v844_v39  ;;  %v850_v43 = vld [vmem:[#allocation25 + $0xb8] sm:$0xff]  ;;  %v883_v40 = vld [vmem:[#allocation25 + $0x1c0] sm:$0xff] }
 0x36a   :  { %v1502_v46 = vpack.c.bf16 %v850_v43, %v846_v41  ;;  %v854_v53 = vld [vmem:[#allocation25 + $0xd8] sm:$0xff]  ;;  %v1442_v54 = vpack.c.bf16 %v856_v52, %v852_v51  ;;  %v887_v41 = vld [vmem:[#allocation25 + $0x1e0] sm:$0xff] }
 0x36b   :  { %v494_v60 = vmul.f32 %v1308_v57, %v486_v58  ;;  %1427 = vmatprep.subr.bf16.mxu1 %v1426_v45  ;;  %v1310_v57 = vld [vmem:[#allocation15] ss:$0 sm:$0xff]  ;;  %v847_v45 = vld [vmem:[#allocation25 + $0xa0] sm:$0xff]  ;;  %v890_v39 = vld [vmem:[#allocation25 + $0x1f8] sm:$0xff]  ;;  %v1460_v43 = vpack.c.bf16 %v887_v41, %v883_v40 }
 0x36c   :  { %1429 = vmatpush1.bf16.msra.mxu1 %v1428_v47  ;;  %v1440_v47 = vpack.c.bf16 %v847_v45, %v843_v44  ;;  %v885_v44 = vld [vmem:[#allocation25 + $0x1d0] sm:$0xff]  ;;  %v898_v51 = vld [vmem:[#allocation25 + $0x238] sm:$0xff]  ;;  %v891_v52 = vld [vmem:[#allocation25 + $0x200] sm:$0xff] }
 0x36d   :  { %v502_v61 = vadd.f32 %v1309_v59, %v494_v60  ;;  %1495 = vmatprep.subr.bf16.mxu1 %v1494_v55  ;;  %v858_v55 = vld [vmem:[#allocation25 + $0xf8] sm:$0xff]  ;;  %v889_v45 = vld [vmem:[#allocation25 + $0x1f0] sm:$0xff] }
 0x36e   :  { %v925_v40 = vld [vmem:[#allocation25 + $0x310] sm:$0xff] }
 0x36f   :  { %vm503_vm4 = vcmp.gt.f32.partialorder %v502_v61, 0.0  ;;  %v504_v62 = vmul.f32 0.2, %v502_v61  ;;  %v929_v41 = vld [vmem:[#allocation25 + $0x330] sm:$0xff] }
 0x371   :  { %v505_v63 = vsel %vm503_vm4, %v502_v61, %v504_v62 }
 0x372   :  { %1372 = vmatmul.mubr.msk.f32.vlgmr.msra.gmra.mrb[4].mxu0 %vm521_vm5, %v505_v63 }
 0x373   :  { %1433 = vmatpush1.bf16.msra.mxu0 %v1432_v56  ;;  %v851_v56 = vld [vmem:[#allocation25 + $0xc0] sm:$0xff] }
 0x374   :  { %1435 = vmatprep.subr.bf16.mxu0 %v1434_v30 }
 0x377   :  { %1437 = vmatpush1.bf16.msra.mxu0 %v1436_v35  ;;  %v884_v35 = vld [vmem:[#allocation25 + $0x1c8] sm:$0xff] }
 0x378   :  { %1439 = vmatprep.subr.bf16.mxu0 %v1438_v42  ;;  %v1522_v42 = vpack.c.bf16 %v890_v39, %v886_v37  ;;  %v927_v37 = vld [vmem:[#allocation25 + $0x320] sm:$0xff] }
 0x37b   :  { %1441 = vmatpush1.bf16.msra.mxu0 %v1440_v47  ;;  %v892_v47 = vld [vmem:[#allocation25 + $0x208] sm:$0xff] }
 0x37c   :  { %1443 = vmatprep.subr.bf16.mxu0 %v1442_v54  ;;  %v1526_v54 = vpack.c.bf16 %v898_v51, %v894_v49  ;;  %v935_v49 = vld [vmem:[#allocation25 + $0x360] sm:$0xff] }
 0x445   :  { %v591_v58 = vpop.f32.mrb[4].mxu0 }
 0x446   :  { %v592_v59 = vadd.f32 %v1310_v57, %v591_v58  ;;  %v1373_v60 = vpop.f32.mrb[5].mxu0  ;;  %v855_v57 = vld [vmem:[#allocation25 + $0xe0] sm:$0xff]  ;;  %v1506_v58 = vpack.c.bf16 %v858_v55, %v854_v53 }
 0x447   :  { %v853_v60 = vld [vmem:[#allocation25 + $0xd0] sm:$0xff]  ;;  %v895_v53 = vld [vmem:[#allocation25 + $0x220] sm:$0xff] }
 0x448   :  { %v596_v61 = vsel %vm595_vm6, %v592_v59, 0.0  ;;  %v1464_v55 = vpack.c.bf16 %v895_v53, %v891_v52  ;;  %v933_v52 = vld [vmem:[#allocation25 + $0x350] sm:$0xff] }
 0x449   :  { %v597_v62 = vrot.slane %v596_v61, 4  ;;  %v937_v53 = vld [vmem:[#allocation25 + $0x370] sm:$0xff] }
 0x44b   :  { %v598_v63 = vadd.f32 %v597_v62, %v596_v61  ;;  %v857_v61 = vld [vmem:[#allocation25 + $0xf0] sm:$0xff] }
 0x44c   :  { %v1508_v62 = vpack.c.bf16 %v857_v61, %v853_v60  ;;  %v904_v60 = vld [vmem:[#allocation25 + $0x268] sm:$0xff]  ;;  %v902_v61 = vld [vmem:[#allocation25 + $0x258] sm:$0xff] }
 0x44d   :  { %v599_v0 = vrot.slane %v598_v63, 2 }
 0x44f   :  { %v600_v1 = vadd.f32 %v599_v0, %v598_v63  ;;  %v860_v63 = vld [vmem:[#allocation25 + $0x108] sm:$0xff] }
 0x450   :  { %v864_v0 = vld [vmem:[#allocation25 + $0x128] sm:$0xff] }
 0x451   :  { %v601_v2 = vrot.slane %v600_v1, 1 }
 0x453   :  { %v602_v3 = vadd.f32 %v601_v2, %v600_v1  ;;  %v862_v1 = vld [vmem:[#allocation25 + $0x118] sm:$0xff]  ;;  %v1446_v2 = vpack.c.bf16 %v864_v0, %v860_v63  ;;  %v899_v0 = vld [vmem:[#allocation25 + $0x240] sm:$0xff] }
 0x454   :  { %v906_v63 = vld [vmem:[#allocation25 + $0x278] sm:$0xff] }
 0x455   :  { %v603_v4 = vmul.f32 0.5, %v602_v3  ;;  %v866_v3 = vld [vmem:[#allocation25 + $0x138] sm:$0xff] }
 0x457   :  { %v604_v5 = vsub.f32 %v592_v59, %v603_v4  ;;  %v1444_v59 = vpack.c.bf16 %v855_v57, %v851_v56  ;;  %v859_v4 = vld [vmem:[#allocation25 + $0x100] sm:$0xff]  ;;  %v893_v56 = vld [vmem:[#allocation25 + $0x210] sm:$0xff] }
 0x458   :  { %v897_v57 = vld [vmem:[#allocation25 + $0x230] sm:$0xff] }
 0x459   :  { %v605_v6 = vmul.f32 %v604_v5, %v604_v5  ;;  %1445 = vmatpush1.bf16.msra.mxu0 %v1444_v59  ;;  %v900_v59 = vld [vmem:[#allocation25 + $0x248] sm:$0xff] }
 0x45a   :  { %1447 = vmatprep.subr.bf16.mxu0 %v1446_v2  ;;  %v1530_v2 = vpack.c.bf16 %v906_v63, %v902_v61  ;;  %v943_v61 = vld [vmem:[#allocation25 + $0x3a0] sm:$0xff] }
 0x45b   :  { %v606_v7 = vsel %vm595_vm6, %v605_v6, 0.0  ;;  %v1510_v6 = vpack.c.bf16 %v866_v3, %v862_v1  ;;  %v903_v1 = vld [vmem:[#allocation25 + $0x260] sm:$0xff] }
 0x45c   :  { %v607_v8 = vrot.slane %v606_v7, 4  ;;  %v1468_v3 = vpack.c.bf16 %v903_v1, %v899_v0  ;;  %v941_v0 = vld [vmem:[#allocation25 + $0x390] sm:$0xff] }
 0x45d   :  { %v945_v1 = vld [vmem:[#allocation25 + $0x3b0] sm:$0xff] }
 0x45e   :  { %v608_v9 = vadd.f32 %v607_v8, %v606_v7  ;;  %v861_v8 = vld [vmem:[#allocation25 + $0x110] sm:$0xff] }
 0x460   :  { %v609_v10 = vrot.slane %v608_v9, 2 }
 0x462   :  { %v610_v11 = vadd.f32 %v609_v10, %v608_v9  ;;  %v865_v9 = vld [vmem:[#allocation25 + $0x130] sm:$0xff] }
 0x463   :  { %v1512_v10 = vpack.c.bf16 %v865_v9, %v861_v8  ;;  %v912_v8 = vld [vmem:[#allocation25 + $0x2a8] sm:$0xff]  ;;  %v910_v9 = vld [vmem:[#allocation25 + $0x298] sm:$0xff] }
 0x464   :  { %v611_v12 = vrot.slane %v610_v11, 1 }
 0x466   :  { %v612_v13 = vadd.f32 %v611_v12, %v610_v11  ;;  %v868_v11 = vld [vmem:[#allocation25 + $0x148] sm:$0xff] }
 0x467   :  { %v872_v12 = vld [vmem:[#allocation25 + $0x168] sm:$0xff] }
 0x468   :  { %v613_v14 = vmul.f32 0.5, %v612_v13  ;;  %v870_v13 = vld [vmem:[#allocation25 + $0x158] sm:$0xff] }
 0x46a   :  { %v614_v15 = vadd.f32 0.8, %v613_v14  ;;  %v1450_v14 = vpack.c.bf16 %v872_v12, %v868_v11  ;;  %v914_v11 = vld [vmem:[#allocation25 + $0x2b8] sm:$0xff]  ;;  %v907_v12 = vld [vmem:[#allocation25 + $0x280] sm:$0xff] }
 0x46c   :  { %1589 = vrsqrt.f32 %v614_v15  ;;  %v874_v15 = vld [vmem:[#allocation25 + $0x178] sm:$0xff] }
 0x476   :  { %v1590_v16 = vpop.eup %1589 }
 0x477   :  { %v616_v18 = vmul.f32 %v1590_v16, %v604_v5  ;;  %v863_v5 = vld [vmem:[#allocation25 + $0x120] sm:$0xff] }
 0x478   :  { %v1448_v7 = vpack.c.bf16 %v863_v5, %v859_v4  ;;  %v867_v16 = vld [vmem:[#allocation25 + $0x140] sm:$0xff]  ;;  %v901_v4 = vld [vmem:[#allocation25 + $0x250] sm:$0xff] }
 0x479   :  { %v624_v20 = vmul.f32 %v1312_v17, %v616_v18  ;;  %v871_v17 = vld [vmem:[#allocation25 + $0x160] sm:$0xff]  ;;  %v1514_v18 = vpack.c.bf16 %v874_v15, %v870_v13  ;;  %v905_v5 = vld [vmem:[#allocation25 + $0x270] sm:$0xff] }
 0x47a   :  { %1449 = vmatpush1.bf16.msra.mxu0 %v1448_v7  ;;  %v908_v7 = vld [vmem:[#allocation25 + $0x288] sm:$0xff]  ;;  %v911_v13 = vld [vmem:[#allocation25 + $0x2a0] sm:$0xff] }
 0x47b   :  { %v632_v23 = vadd.f32 %v1313_v19, %v624_v20  ;;  %v1452_v19 = vpack.c.bf16 %v871_v17, %v867_v16  ;;  %v869_v20 = vld [vmem:[#allocation25 + $0x150] sm:$0xff]  ;;  %1451 = vmatprep.subr.bf16.mxu0 %v1450_v14  ;;  %v1534_v14 = vpack.c.bf16 %v914_v11, %v910_v9  ;;  %v1472_v15 = vpack.c.bf16 %v911_v13, %v907_v12  ;;  %v951_v9 = vld [vmem:[#allocation25 + $0x3e0] sm:$0xff] }
 0x47c   :  { %v1516_v22 = vpack.c.bf16 %v873_v21, %v869_v20  ;;  %v909_v16 = vld [vmem:[#allocation25 + $0x290] sm:$0xff]  ;;  %v920_v20 = vld [vmem:[#allocation25 + $0x2e8] sm:$0xff]  ;;  %v918_v21 = vld [vmem:[#allocation25 + $0x2d8] sm:$0xff] }
 0x47d   :  { %vm633_vm7 = vcmp.gt.f32.partialorder %v632_v23, 0.0  ;;  %v634_v24 = vmul.f32 0.2, %v632_v23  ;;  %v913_v17 = vld [vmem:[#allocation25 + $0x2b0] sm:$0xff] }
 0x47e   :  { %1453 = vmatpush1.bf16.msra.mxu0 %v1452_v19  ;;  %v916_v19 = vld [vmem:[#allocation25 + $0x2c8] sm:$0xff]  ;;  %v949_v12 = vld [vmem:[#allocation25 + $0x3d0] sm:$0xff] }
 0x47f   :  { %v635_v26 = vsel %vm633_vm7, %v632_v23, %v634_v24  ;;  %v876_v23 = vld [vmem:[#allocation25 + $0x188] sm:$0xff]  ;;  %v953_v13 = vld [vmem:[#allocation25 + $0x3f0] sm:$0xff] }
 0x480   :  { %745 = vmatmul.mubr.f32.vlgmr.msra.gmra.mrb[0].mxu1 %v635_v26  ;;  %v880_v24 = vld [vmem:[#allocation25 + $0x1a8] sm:$0xff] }
 0x481   :  { %1497 = vmatpush1.bf16.msra.mxu1 %v1496_v25  ;;  %v878_v25 = vld [vmem:[#allocation25 + $0x198] sm:$0xff]  ;;  %v1454_v26 = vpack.c.bf16 %v880_v24, %v876_v23  ;;  %v915_v24 = vld [vmem:[#allocation25 + $0x2c0] sm:$0xff] }
 0x482   :  { %1499 = vmatprep.subr.bf16.mxu1 %v1498_v34  ;;  %v1518_v30 = vpack.c.bf16 %v882_v27, %v878_v25  ;;  %v1520_v34 = vpack.c.bf16 %v881_v33, %v877_v32  ;;  %v922_v23 = vld [vmem:[#allocation25 + $0x2f8] sm:$0xff]  ;;  %v919_v25 = vld [vmem:[#allocation25 + $0x2e0] sm:$0xff]  ;;  %v928_v32 = vld [vmem:[#allocation25 + $0x328] sm:$0xff] }
 0x483   :  { %1455 = vmatprep.subr.bf16.mxu0 %v1454_v26  ;;  %v1538_v26 = vpack.c.bf16 %v922_v23, %v918_v21  ;;  %v1476_v27 = vpack.c.bf16 %v919_v25, %v915_v24  ;;  %v926_v33 = vld [vmem:[#allocation25 + $0x318] sm:$0xff] }
 0x484   :  { %1457 = vmatpush1.bf16.msra.mxu0 %v1456_v31  ;;  %v924_v31 = vld [vmem:[#allocation25 + $0x308] sm:$0xff] }
 0x485   :  { %1501 = vmatpush1.bf16.msra.mxu1 %v1500_v38  ;;  %v1458_v38 = vpack.c.bf16 %v888_v36, %v884_v35  ;;  %v930_v35 = vld [vmem:[#allocation25 + $0x338] sm:$0xff]  ;;  %v923_v36 = vld [vmem:[#allocation25 + $0x300] sm:$0xff] }
 0x486   :  { %1503 = vmatprep.subr.bf16.mxu1 %v1502_v46  ;;  %v1524_v46 = vpack.c.bf16 %v889_v45, %v885_v44  ;;  %v1480_v39 = vpack.c.bf16 %v927_v37, %v923_v36  ;;  %v936_v44 = vld [vmem:[#allocation25 + $0x368] sm:$0xff]  ;;  %v934_v45 = vld [vmem:[#allocation25 + $0x358] sm:$0xff] }
 0x487   :  { %1459 = vmatprep.subr.bf16.mxu0 %v1458_v38  ;;  %v1542_v38 = vpack.c.bf16 %v930_v35, %v926_v33 }
 0x488   :  { %1461 = vmatpush1.bf16.msra.mxu0 %v1460_v43  ;;  %v932_v43 = vld [vmem:[#allocation25 + $0x348] sm:$0xff] }
 0x489   :  { %1505 = vmatpush1.bf16.msra.mxu1 %v1504_v50  ;;  %v1462_v50 = vpack.c.bf16 %v896_v48, %v892_v47  ;;  %v938_v47 = vld [vmem:[#allocation25 + $0x378] sm:$0xff]  ;;  %v931_v48 = vld [vmem:[#allocation25 + $0x340] sm:$0xff] }
 0x48a   :  { %1507 = vmatprep.subr.bf16.mxu1 %v1506_v58  ;;  %v1528_v58 = vpack.c.bf16 %v897_v57, %v893_v56  ;;  %v1484_v51 = vpack.c.bf16 %v935_v49, %v931_v48  ;;  %v944_v56 = vld [vmem:[#allocation25 + $0x3a8] sm:$0xff]  ;;  %v942_v57 = vld [vmem:[#allocation25 + $0x398] sm:$0xff] }
 0x48b   :  { %1463 = vmatprep.subr.bf16.mxu0 %v1462_v50  ;;  %v1546_v50 = vpack.c.bf16 %v938_v47, %v934_v45 }
 0x48c   :  { %1465 = vmatpush1.bf16.msra.mxu0 %v1464_v55  ;;  %v940_v55 = vld [vmem:[#allocation25 + $0x388] sm:$0xff] }
 0x48d   :  { %1509 = vmatpush1.bf16.msra.mxu1 %v1508_v62  ;;  %v1466_v62 = vpack.c.bf16 %v904_v60, %v900_v59  ;;  %v946_v59 = vld [vmem:[#allocation25 + $0x3b8] sm:$0xff]  ;;  %v939_v60 = vld [vmem:[#allocation25 + $0x380] sm:$0xff] }
 0x48e   :  { %1511 = vmatprep.subr.bf16.mxu1 %v1510_v6  ;;  %v1532_v6 = vpack.c.bf16 %v905_v5, %v901_v4  ;;  %v1488_v63 = vpack.c.bf16 %v943_v61, %v939_v60  ;;  %v952_v4 = vld [vmem:[#allocation25 + $0x3e8] sm:$0xff]  ;;  %v950_v5 = vld [vmem:[#allocation25 + $0x3d8] sm:$0xff] }
 0x48f   :  { %1467 = vmatprep.subr.bf16.mxu0 %v1466_v62  ;;  %v1550_v62 = vpack.c.bf16 %v946_v59, %v942_v57 }
 0x490   :  { %1469 = vmatpush1.bf16.msra.mxu0 %v1468_v3  ;;  %v948_v3 = vld [vmem:[#allocation25 + $0x3c8] sm:$0xff] }
 0x491   :  { %1513 = vmatpush1.bf16.msra.mxu1 %v1512_v10  ;;  %v1470_v10 = vpack.c.bf16 %v912_v8, %v908_v7  ;;  %v954_v7 = vld [vmem:[#allocation25 + $0x3f8] sm:$0xff]  ;;  %v947_v8 = vld [vmem:[#allocation25 + $0x3c0] sm:$0xff] }
 0x492   :  { %1515 = vmatprep.subr.bf16.mxu1 %v1514_v18  ;;  %v1536_v18 = vpack.c.bf16 %v913_v17, %v909_v16  ;;  %v1492_v11 = vpack.c.bf16 %v951_v9, %v947_v8 }
 0x493   :  { %1471 = vmatprep.subr.bf16.mxu0 %v1470_v10  ;;  %v1554_v10 = vpack.c.bf16 %v954_v7, %v950_v5 }
 0x494   :  { %1473 = vmatpush1.bf16.msra.mxu0 %v1472_v15  ;;  %v670_v15 = vlaneseq }
 0x495   :  { %1517 = vmatpush1.bf16.msra.mxu1 %v1516_v22  ;;  %v1474_v22 = vpack.c.bf16 %v920_v20, %v916_v19 }
 0x496   :  { %1519 = vmatprep.subr.bf16.mxu1 %v1518_v30  ;;  %v1540_v30 = vpack.c.bf16 %v921_v29, %v917_v28  ;;  %v2421_v16 = vshrl.u32 %v670_v15, 7 }
 0x497   :  { %1475 = vmatprep.subr.bf16.mxu0 %v1474_v22 }
 0x498   :  { %1477 = vmatpush1.bf16.msra.mxu0 %v1476_v27  ;;  %v2424_v17 = vsub.s32 0, %v2421_v16  ;;  %v2427_v19 = vsub.s32 1, %v2421_v16 }
 0x499   :  { %1521 = vmatpush1.bf16.msra.mxu1 %v1520_v34  ;;  %v1478_v34 = vpack.c.bf16 %v928_v32, %v924_v31 }
 0x49a   :  { %1523 = vmatprep.subr.bf16.mxu1 %v1522_v42  ;;  %v1544_v42 = vpack.c.bf16 %v929_v41, %v925_v40 }
 0x49b   :  { %1479 = vmatprep.subr.bf16.mxu0 %v1478_v34 }
 0x49c   :  { %1481 = vmatpush1.bf16.msra.mxu0 %v1480_v39 }
 0x49d   :  { %1525 = vmatpush1.bf16.msra.mxu1 %v1524_v46  ;;  %v1482_v46 = vpack.c.bf16 %v936_v44, %v932_v43 }
 0x49e   :  { %1527 = vmatprep.subr.bf16.mxu1 %v1526_v54  ;;  %v1548_v54 = vpack.c.bf16 %v937_v53, %v933_v52 }
 0x49f   :  { %1483 = vmatprep.subr.bf16.mxu0 %v1482_v46 }
 0x4a0   :  { %1485 = vmatpush1.bf16.msra.mxu0 %v1484_v51 }
 0x4a1   :  { %1529 = vmatpush1.bf16.msra.mxu1 %v1528_v58  ;;  %v1486_v58 = vpack.c.bf16 %v944_v56, %v940_v55 }
 0x4a2   :  { %1531 = vmatprep.subr.bf16.mxu1 %v1530_v2  ;;  %v1552_v2 = vpack.c.bf16 %v945_v1, %v941_v0  ;;  %v793_v0 = vld [vmem:[#allocation22] sm:$0x3]  ;;  %v807_v1 = vld [vmem:[#allocation24] sm:$0x3] }
 0x4a3   :  { %1487 = vmatprep.subr.bf16.mxu0 %v1486_v58  ;;  %v812_v7 = vrot.slane %v807_v1, %v2424_v17  ;;  %v816_v9 = vrot.slane %v807_v1, %v2427_v19 }
 0x4a4   :  { %1489 = vmatpush1.bf16.msra.mxu0 %v1488_v63 }
 0x4a5   :  { %1533 = vmatpush1.bf16.msra.mxu1 %v1532_v6  ;;  %v1490_v6 = vpack.c.bf16 %v952_v4, %v948_v3  ;;  %v802_v4 = vrot.slane %v793_v0, %v2427_v19 }
 0x4a6   :  { %1535 = vmatprep.subr.bf16.mxu1 %v1534_v14  ;;  %v1556_v14 = vpack.c.bf16 %v953_v13, %v949_v12 }
 0x4a7   :  { %1491 = vmatprep.subr.bf16.mxu0 %v1490_v6 }
 0x4a8   :  { %1493 = vmatpush1.bf16.msra.mxu0 %v1492_v11 }
 0x4a9   :  { %1537 = vmatpush1.bf16.msra.mxu1 %v1536_v18  ;;  %v668_v18 = vld [vmem:[#allocation21] sm:$0x3] }
 0x4aa   :  { %1539 = vmatprep.subr.bf16.mxu1 %v1538_v26  ;;  %v673_v20 = vrot.slane %v668_v18, %v2424_v17  ;;  %v677_v21 = vrot.slane %v668_v18, %v2427_v19 }
 0x4ad   :  { %1541 = vmatpush1.bf16.msra.mxu1 %v1540_v30 }
 0x4ae   :  { %1543 = vmatprep.subr.bf16.mxu1 %v1542_v38 }
 0x4b1   :  { %1545 = vmatpush1.bf16.msra.mxu1 %v1544_v42 }
 0x4b2   :  { %1547 = vmatprep.subr.bf16.mxu1 %v1546_v50 }
 0x4b5   :  { %1549 = vmatpush1.bf16.msra.mxu1 %v1548_v54 }
 0x4b6   :  { %1551 = vmatprep.subr.bf16.mxu1 %v1550_v62 }
 0x4b9   :  { %1553 = vmatpush1.bf16.msra.mxu1 %v1552_v2  ;;  %v798_v2 = vrot.slane %v793_v0, %v2424_v17 }
 0x4ba   :  { %1555 = vmatprep.subr.bf16.mxu1 %v1554_v10 }
 0x4bd   :  { %1557 = vmatpush1.bf16.msra.mxu1 %v1556_v14 }
 0x553   :  { %v746_v22 = vpop.f32.mrb[0].mxu1 }
 0x554   :  { %v747_v23 = vadd.f32 %v746_v22, %v673_v20  ;;  %v748_v24 = vpop.f32.mrb[1].mxu1  ;;  %v955_v22 = vld [vmem:[#allocation27] sm:$0xf] }
 0x555   :  { %v749_v25 = vadd.f32 %v748_v24, %v677_v21  ;;  %v2440_v21 = vsub.s32 2, %v2421_v16  ;;  %v960_v24 = vrot.slane %v955_v22, %v2424_v17 }
 0x556   :  { %v751_v26 = vsel %vm595_vm6, %v747_v23, 0.0 }
 0x557   :  { %v752_v27 = vrot.slane %v751_v26, 4  ;;  %v758_v28 = vsel %vm595_vm6, %v749_v25, 0.0 }
 0x558   :  { %v759_v29 = vrot.slane %v758_v28, 4 }
 0x559   :  { %v753_v30 = vadd.f32 %v752_v27, %v751_v26  ;;  %v964_v26 = vrot.slane %v955_v22, %v2427_v19 }
 0x55a   :  { %v760_v31 = vadd.f32 %v759_v29, %v758_v28 }
 0x55b   :  { %v754_v32 = vrot.slane %v753_v30, 2 }
 0x55c   :  { %v761_v33 = vrot.slane %v760_v31, 2 }
 0x55d   :  { %v755_v34 = vadd.f32 %v754_v32, %v753_v30 }
 0x55e   :  { %v762_v35 = vadd.f32 %v761_v33, %v760_v31 }
 0x55f   :  { %v756_v36 = vrot.slane %v755_v34, 1 }
 0x560   :  { %v763_v37 = vrot.slane %v762_v35, 1 }
 0x561   :  { %v757_v38 = vadd.f32 %v756_v36, %v755_v34 }
 0x562   :  { %v764_v39 = vadd.f32 %v763_v37, %v762_v35 }
 0x563   :  { %v765_v40 = vmul.f32 0.5, %v757_v38 }
 0x564   :  { %v766_v41 = vmul.f32 0.5, %v764_v39 }
 0x565   :  { %v767_v42 = vsub.f32 %v747_v23, %v765_v40  ;;  %v2443_v23 = vsub.s32 3, %v2421_v16 }
 0x566   :  { %v768_v43 = vsub.f32 %v749_v25, %v766_v41  ;;  %v968_v25 = vrot.slane %v955_v22, %v2440_v21 }
 0x567   :  { %v769_v44 = vmul.f32 %v767_v42, %v767_v42  ;;  %v972_v27 = vrot.slane %v955_v22, %v2443_v23 }
 0x568   :  { %v770_v45 = vmul.f32 %v768_v43, %v768_v43 }
 0x569   :  { %v771_v46 = vsel %vm595_vm6, %v769_v44, 0.0 }
 0x56a   :  { %v772_v47 = vrot.slane %v771_v46, 4  ;;  %v778_v48 = vsel %vm595_vm6, %v770_v45, 0.0 }
 0x56b   :  { %v779_v49 = vrot.slane %v778_v48, 4 }
 0x56c   :  { %v773_v50 = vadd.f32 %v772_v47, %v771_v46 }
 0x56d   :  { %v780_v51 = vadd.f32 %v779_v49, %v778_v48 }
 0x56e   :  { %v774_v52 = vrot.slane %v773_v50, 2 }
 0x56f   :  { %v781_v53 = vrot.slane %v780_v51, 2 }
 0x570   :  { %v775_v54 = vadd.f32 %v774_v52, %v773_v50 }
 0x571   :  { %v782_v55 = vadd.f32 %v781_v53, %v780_v51 }
 0x572   :  { %v776_v56 = vrot.slane %v775_v54, 1 }
 0x573   :  { %v783_v57 = vrot.slane %v782_v55, 1 }
 0x574   :  { %v777_v58 = vadd.f32 %v776_v56, %v775_v54 }
 0x575   :  { %v784_v59 = vadd.f32 %v783_v57, %v782_v55 }
 0x576   :  { %v785_v60 = vmul.f32 0.5, %v777_v58 }
 0x577   :  { %v786_v61 = vmul.f32 0.5, %v784_v59 }
 0x578   :  { %v787_v62 = vadd.f32 0.8, %v785_v60 }
 0x579   :  { %v788_v63 = vadd.f32 0.8, %v786_v61 }
 0x57a   :  { %1591 = vrsqrt.f32 %v787_v62 }
 0x57b   :  { %1593 = vrsqrt.f32 %v788_v63 }
 0x584   :  { %v1592_v3 = vpop.eup %1591 }
 0x585   :  { %v1594_v5 = vpop.eup %1593  ;;  %v791_v6 = vmul.f32 %v1592_v3, %v767_v42 }
 0x586   :  { %v792_v8 = vmul.f32 %v1594_v5, %v768_v43 }
 0x587   :  { %v805_v10 = vmul.f32 %v798_v2, %v791_v6 }
 0x588   :  { %v806_v11 = vmul.f32 %v802_v4, %v792_v8 }
 0x589   :  { %v819_v12 = vadd.f32 %v812_v7, %v805_v10 }
 0x58a   :  { %v820_v13 = vadd.f32 %v816_v9, %v806_v11 }
 0x58b   :  { %v823_v14 = vmul.f32 0.2, %v819_v12  ;;  %vm821_vm9 = vcmp.gt.f32.partialorder %v819_v12, 0.0 }
 0x58c   :  { %vm822_vm8 = vcmp.gt.f32.partialorder %v820_v13, 0.0  ;;  %v824_v15 = vmul.f32 0.2, %v820_v13 }
 0x58d   :  { %v825_v20 = vsel %vm821_vm9, %v819_v12, %v823_v14 }
 0x58e   :  { %v826_v18 = vsel %vm822_vm8, %v820_v13, %v824_v15 }
 0x58f   :  { %1041 = vmatprep.mubr.f32.mxu0 %v826_v18  ;;  %1112 = vmatprep.mubr.f32.mxu1 %v826_v18 }
 0x590   :  { %1042 = vmatmul.mubr.f32.vlgmr.msra.gmra.mrb[6].mxu0 %v825_v20  ;;  %1113 = vmatmul.mubr.f32.vlgmr.msra.gmra.mrb[2].mxu1 %v825_v20 }
 0x663   :  { %v1043_v28 = vpop.f32.mrb[6].mxu0  ;;  %v1114_v29 = vpop.f32.mrb[2].mxu1 }
 0x664   :  { %v1044_v30 = vadd.f32 %v1043_v28, %v960_v24  ;;  %v1115_v31 = vadd.f32 %v1114_v29, %v968_v25  ;;  %v1045_v32 = vpop.f32.mrb[7].mxu0  ;;  %v1116_v33 = vpop.f32.mrb[3].mxu1 }
 0x665   :  { %v1046_v34 = vadd.f32 %v1045_v32, %v964_v26  ;;  %v1117_v35 = vadd.f32 %v1116_v33, %v972_v27 }
 0x666   :  { %v1119_v36 = vsel %vm595_vm6, %v1044_v30, 0.0  ;;  %v1133_v37 = vsel %vm595_vm6, %v1115_v31, 0.0 }
 0x667   :  { %v1120_v38 = vrot.slane %v1119_v36, 4  ;;  %v1134_v39 = vrot.slane %v1133_v37, 4  ;;  %v1126_v40 = vsel %vm595_vm6, %v1046_v34, 0.0  ;;  %v1140_v41 = vsel %vm595_vm6, %v1117_v35, 0.0 }
 0x668   :  { %v1127_v42 = vrot.slane %v1126_v40, 4  ;;  %v1141_v43 = vrot.slane %v1140_v41, 4 }
 0x669   :  { %v1121_v44 = vadd.f32 %v1120_v38, %v1119_v36  ;;  %v1135_v45 = vadd.f32 %v1134_v39, %v1133_v37 }
 0x66a   :  { %v1128_v46 = vadd.f32 %v1127_v42, %v1126_v40  ;;  %v1142_v47 = vadd.f32 %v1141_v43, %v1140_v41 }
 0x66b   :  { %v1122_v48 = vrot.slane %v1121_v44, 2  ;;  %v1136_v49 = vrot.slane %v1135_v45, 2 }
 0x66c   :  { %v1129_v50 = vrot.slane %v1128_v46, 2  ;;  %v1143_v51 = vrot.slane %v1142_v47, 2 }
 0x66d   :  { %v1123_v52 = vadd.f32 %v1122_v48, %v1121_v44  ;;  %v1137_v53 = vadd.f32 %v1136_v49, %v1135_v45 }
 0x66e   :  { %v1130_v54 = vadd.f32 %v1129_v50, %v1128_v46  ;;  %v1144_v55 = vadd.f32 %v1143_v51, %v1142_v47 }
 0x66f   :  { %v1124_v56 = vrot.slane %v1123_v52, 1  ;;  %v1138_v57 = vrot.slane %v1137_v53, 1 }
 0x670   :  { %v1131_v58 = vrot.slane %v1130_v54, 1  ;;  %v1145_v59 = vrot.slane %v1144_v55, 1 }
 0x671   :  { %v1125_v60 = vadd.f32 %v1124_v56, %v1123_v52  ;;  %v1139_v61 = vadd.f32 %v1138_v57, %v1137_v53  ;;  %v1203_v53 = vld [vmem:[#allocation28] sm:$0xf] }
 0x672   :  { %v1132_v62 = vadd.f32 %v1131_v58, %v1130_v54  ;;  %v1146_v63 = vadd.f32 %v1145_v59, %v1144_v55  ;;  %v1229_v54 = vld [vmem:[#allocation30] sm:$0xf]  ;;  %v1208_v55 = vrot.slane %v1203_v53, %v2424_v17  ;;  %v1216_v57 = vrot.slane %v1203_v53, %v2440_v21 }
 0x673   :  { %v1147_v0 = vmul.f32 0.5, %v1125_v60  ;;  %v1149_v1 = vmul.f32 0.5, %v1139_v61  ;;  %v1234_v60 = vrot.slane %v1229_v54, %v2424_v17  ;;  %v1212_v61 = vrot.slane %v1203_v53, %v2427_v19 }
 0x674   :  { %v1148_v2 = vmul.f32 0.5, %v1132_v62  ;;  %v1150_v3 = vmul.f32 0.5, %v1146_v63  ;;  %v1246_v17 = vrot.slane %v1229_v54, %v2443_v23 }
 0x675   :  { %v1151_v4 = vsub.f32 %v1044_v30, %v1147_v0  ;;  %v1153_v5 = vsub.f32 %v1115_v31, %v1149_v1  ;;  %v1242_v0 = vrot.slane %v1229_v54, %v2440_v21  ;;  %v2069_v1 = vmov 1983009808  }
 0x676   :  { %v2453_v6 = vsub.f32 %v1046_v34, %v1148_v2  ;;  %v2455_v7 = vsub.f32 %v1117_v35, %v1150_v3  ;;  %v1274_v2 = vunpack.c.l.s4 %v2069_v1  ;;  %v1220_v3 = vrot.slane %v1203_v53, %v2443_v23 }
 0x677   :  { %v1155_v8 = vmul.f32 %v1151_v4, %v1151_v4  ;;  %v1157_v9 = vmul.f32 %v1153_v5, %v1153_v5 }
 0x678   :  { %v1156_v10 = vmul.f32 %v2453_v6, %v2453_v6  ;;  %v1158_v11 = vmul.f32 %v2455_v7, %v2455_v7 }
 0x679   :  { %v1159_v12 = vsel %vm595_vm6, %v1155_v8, 0.0  ;;  %v1173_v13 = vsel %vm595_vm6, %v1157_v9, 0.0 }
 0x67a   :  { %v1160_v14 = vrot.slane %v1159_v12, 4  ;;  %v1174_v15 = vrot.slane %v1173_v13, 4  ;;  %v1166_v18 = vsel %vm595_vm6, %v1156_v10, 0.0  ;;  %v1180_v20 = vsel %vm595_vm6, %v1158_v11, 0.0 }
 0x67b   :  { %v1167_v22 = vrot.slane %v1166_v18, 4  ;;  %v1181_v24 = vrot.slane %v1180_v20, 4  ;;  %v1238_v11 = vrot.slane %v1229_v54, %v2427_v19 }
 0x67c   :  { %v1161_v25 = vadd.f32 %v1160_v14, %v1159_v12  ;;  %v1175_v26 = vadd.f32 %v1174_v15, %v1173_v13  ;;  %v1275_v15 = vunpack.c.0.s8 %v1274_v2 }
 0x67d   :  { %v1168_v27 = vadd.f32 %v1167_v22, %v1166_v18  ;;  %v1182_v28 = vadd.f32 %v1181_v24, %v1180_v20 }
 0x67e   :  { %v1162_v29 = vrot.slane %v1161_v25, 2  ;;  %v1176_v30 = vrot.slane %v1175_v26, 2 }
 0x67f   :  { %v1169_v31 = vrot.slane %v1168_v27, 2  ;;  %v1183_v32 = vrot.slane %v1182_v28, 2 }
 0x680   :  { %v1163_v33 = vadd.f32 %v1162_v29, %v1161_v25  ;;  %v1177_v34 = vadd.f32 %v1176_v30, %v1175_v26  ;;  %v1278_v26 = vsub.s32 %v1275_v15, %v2421_v16 }
 0x681   :  { %v1170_v35 = vadd.f32 %v1169_v31, %v1168_v27  ;;  %v1184_v36 = vadd.f32 %v1183_v32, %v1182_v28 }
 0x682   :  { %v1164_v37 = vrot.slane %v1163_v33, 1  ;;  %v1178_v38 = vrot.slane %v1177_v34, 1 }
 0x683   :  { %v1171_v39 = vrot.slane %v1170_v35, 1  ;;  %v1185_v40 = vrot.slane %v1184_v36, 1 }
 0x684   :  { %v1165_v41 = vadd.f32 %v1164_v37, %v1163_v33  ;;  %v1179_v42 = vadd.f32 %v1178_v38, %v1177_v34 }
 0x685   :  { %v1172_v43 = vadd.f32 %v1171_v39, %v1170_v35  ;;  %v1186_v44 = vadd.f32 %v1185_v40, %v1184_v36 }
 0x686   :  { %v1187_v45 = vmul.f32 0.5, %v1165_v41  ;;  %v1189_v46 = vmul.f32 0.5, %v1179_v42 }
 0x687   :  { %v1188_v47 = vmul.f32 0.5, %v1172_v43  ;;  %v1190_v48 = vmul.f32 0.5, %v1186_v44 }
 0x688   :  { %v1191_v49 = vadd.f32 0.8, %v1187_v45  ;;  %v1193_v50 = vadd.f32 0.8, %v1189_v46 }
 0x689   :  { %v1192_v51 = vadd.f32 0.8, %v1188_v47  ;;  %v1194_v52 = vadd.f32 0.8, %v1190_v48 }
 0x68a   :  { %1595 = vrsqrt.f32 %v1191_v49 }
 0x68b   :  { %1597 = vrsqrt.f32 %v1193_v50 }
 0x68c   :  { %1599 = vrsqrt.f32 %v1192_v51 }
 0x68d   :  { %1601 = vrsqrt.f32 %v1194_v52 }
 0x694   :  { %v1596_v56 = vpop.eup %1595 }
 0x695   :  { %v1598_v58 = vpop.eup %1597  ;;  %v1199_v59 = vmul.f32 %v1596_v56, %v1151_v4 }
 0x696   :  { %v1600_v62 = vpop.eup %1599  ;;  %v1201_v63 = vmul.f32 %v1598_v58, %v1153_v5 }
 0x697   :  { %v1602_v8 = vpop.eup %1601  ;;  %v1225_v9 = vmul.f32 %v1208_v55, %v1199_v59  ;;  %v1200_v10 = vmul.f32 %v1600_v62, %v2453_v6 }
 0x698   :  { %v1227_v12 = vmul.f32 %v1216_v57, %v1201_v63  ;;  %v1202_v4 = vmul.f32 %v1602_v8, %v2455_v7 }
 0x699   :  { %v1251_v13 = vadd.f32 %v1234_v60, %v1225_v9  ;;  %v1226_v14 = vmul.f32 %v1212_v61, %v1200_v10 }
 0x69a   :  { %v1253_v5 = vadd.f32 %v1242_v0, %v1227_v12  ;;  %v1228_v21 = vmul.f32 %v1220_v3, %v1202_v4 }
 0x69b   :  { %vm1255_vm10 = vcmp.gt.f32.partialorder %v1251_v13, 0.0  ;;  %v1259_v18 = vmul.f32 0.2, %v1251_v13  ;;  %v1252_v20 = vadd.f32 %v1238_v11, %v1226_v14 }
 0x69c   :  { %vm1257_vm11 = vcmp.gt.f32.partialorder %v1253_v5, 0.0  ;;  %v1261_v22 = vmul.f32 0.2, %v1253_v5  ;;  %v1254_v24 = vadd.f32 %v1246_v17, %v1228_v21 }
 0x69d   :  { %v1263_v25 = vsel %vm1255_vm10, %v1251_v13, %v1259_v18  ;;  %vm1256_vm12 = vcmp.gt.f32.partialorder %v1252_v20, 0.0  ;;  %v1260_v6 = vmul.f32 0.2, %v1252_v20 }
 0x69e   :  { %v1265_v19 = vsel %vm1257_vm11, %v1253_v5, %v1261_v22  ;;  %vm1258_vm13 = vcmp.gt.f32.partialorder %v1254_v24, 0.0  ;;  %v1262_v7 = vmul.f32 0.2, %v1254_v24 }
 0x69f   :  { %v1264_v23 = vsel %vm1256_vm12, %v1252_v20, %v1260_v6 }
 0x6a0   :  { %v1271_v27 = vcombine.low %v1263_v25, %v1264_v23  ;;  %v1266_v28 = vsel %vm1258_vm13, %v1254_v24, %v1262_v7 }
 0x6a1   :  { %v1272_v29 = vcombine.low %v1265_v19, %v1266_v28 }
 0x6a2   :  { %v1279_v30 = vrot.slane %v1271_v27, %v1278_v26 }
 0x6a3   :  { %v1286_v31 = vrot.slane %v1272_v29, %v1278_v26 }
 0x6a5   :  { %v1287_v32 = vcombine.low %v1279_v30, %v1286_v31 }
 0x6a7   :  { %1289 = vst [vmem:[%s2518_s22] sm:$0xff] %v1287_v32 }
 0x6a8   :  { %1294 = vsyncpa [#allocation3], 1 }
 0x6a9   :  { %1295 = vsyncpa [#allocation5], 1 }
 0x6aa   :  { %1296 = vsyncpa [#allocation8], 1 }
 0x6ab   :  { %1297 = vsyncpa [#allocation11], 1 }
 0x6ac   :  { %1298 = vsyncpa [#allocation14], 1 }
 0x6ad   :  { %1299 = vsyncpa [#allocation17], 1 }
 0x6ae   :  { %1300 = vsyncpa [#allocation20], 1 }
 0x6af   :  { %1301 = vsyncpa [#allocation23], 1 }
 0x6b0   :  { %1302 = vsyncpa [#allocation26], 1 }
 0x6b1   :  { %1303 = vsyncpa [#allocation29], 1 }

// kernel: generator_forward.3
= control target key start
LH: loop header
LB: loop body
LE: loop exit
PB: predicated region body
PF: predicated region fallthrough
CT: control target
= control target key end

     0   :  { %s2635_s1 = inlined_call_operand.vmem [shape: bf16[512,768], index: 1, kind: input, shape index: {}]   ;;  %s2636_s0 = inlined_call_operand.vmem [shape: bf16[8,512], index: 0, kind: input, shape index: {}]   ;;  %s2637_s2 = inlined_call_operand.vmem [shape: f32[1,768], index: 2, kind: input, shape index: {}]   ;;  %s2638_s3 = inlined_call_operand.vmem [shape: f32[8,768], index: 3, kind: output, shape index: {}]  }
   0x1   :  { %v1688_v0 = vld [vmem:[%s2635_s1 + $0x4] ss:$24 sps:$4 sm:$0xff]   ;;  %v1692_v2 = vld [vmem:[%s2635_s1] ss:$24 sps:$4 sm:$0xff]   ;;  %v1694_v4 = vld [vmem:[%s2635_s1 + $0x34] ss:$24 sps:$4 sm:$0xff]  }
   0x2   :  { %v1690_v1 = vld [vmem:[%s2635_s1 + $0x304] ss:$24 sps:$4 sm:$0xff]   ;;  %1214 = vmatprep.subr.bf16.mxu1 %v1688_v0  ;;  %v1693_v3 = vld [vmem:[%s2635_s1 + $0x300] ss:$24 sps:$4 sm:$0xff]   ;;  %v1696_v5 = vld [vmem:[%s2635_s1 + $0x334] ss:$24 sps:$4 sm:$0xff]  }
   0x3   :  { %1255 = vmatprep.subr.bf16.mxu0 %v1690_v1  ;;  %1215 = vmatpush1.bf16.msra.mxu1 %v1692_v2  ;;  %v1698_v6 = vld [vmem:[%s2635_s1 + $0x30] ss:$24 sps:$4 sm:$0xff]   ;;  %v1700_v8 = vld [vmem:[%s2635_s1 + $0x64] ss:$24 sps:$4 sm:$0xff]   ;;  %v1704_v10 = vld [vmem:[%s2635_s1 + $0x60] ss:$24 sps:$4 sm:$0xff]  }
   0x4   :  { %1256 = vmatpush1.bf16.msra.mxu0 %v1693_v3  ;;  %1216 = vmatprep.subr.bf16.mxu1 %v1694_v4  ;;  %v1699_v7 = vld [vmem:[%s2635_s1 + $0x330] ss:$24 sps:$4 sm:$0xff]   ;;  %v1702_v9 = vld [vmem:[%s2635_s1 + $0x364] ss:$24 sps:$4 sm:$0xff]   ;;  %v1705_v11 = vld [vmem:[%s2635_s1 + $0x360] ss:$24 sps:$4 sm:$0xff]  }
   0x5   :  { %1257 = vmatprep.subr.bf16.mxu0 %v1696_v5  ;;  %v1706_v12 = vld [vmem:[%s2635_s1 + $0x94] ss:$24 sps:$4 sm:$0xff]   ;;  %v1710_v14 = vld [vmem:[%s2635_s1 + $0x90] ss:$24 sps:$4 sm:$0xff]   ;;  %v1712_v16 = vld [vmem:[%s2635_s1 + $0xc4] ss:$24 sps:$4 sm:$0xff]  }
   0x6   :  { %v1708_v13 = vld [vmem:[%s2635_s1 + $0x394] ss:$24 sps:$4 sm:$0xff]   ;;  %v1711_v15 = vld [vmem:[%s2635_s1 + $0x390] ss:$24 sps:$4 sm:$0xff]   ;;  %v1714_v17 = vld [vmem:[%s2635_s1 + $0x3c4] ss:$24 sps:$4 sm:$0xff]  }
   0x7   :  { %1217 = vmatpush1.bf16.msra.mxu1 %v1698_v6  ;;  %v1716_v18 = vld [vmem:[%s2635_s1 + $0xc0] ss:$24 sps:$4 sm:$0xff]   ;;  %v1718_v20 = vld [vmem:[%s2635_s1 + $0xf4] ss:$24 sps:$4 sm:$0xff]   ;;  %v1722_v22 = vld [vmem:[%s2635_s1 + $0xf0] ss:$24 sps:$4 sm:$0xff]  }
   0x8   :  { %1258 = vmatpush1.bf16.msra.mxu0 %v1699_v7  ;;  %1218 = vmatprep.subr.bf16.mxu1 %v1700_v8  ;;  %v1717_v19 = vld [vmem:[%s2635_s1 + $0x3c0] ss:$24 sps:$4 sm:$0xff]   ;;  %v1720_v21 = vld [vmem:[%s2635_s1 + $0x3f4] ss:$24 sps:$4 sm:$0xff]   ;;  %v1723_v23 = vld [vmem:[%s2635_s1 + $0x3f0] ss:$24 sps:$4 sm:$0xff]  }
   0x9   :  { %1259 = vmatprep.subr.bf16.mxu0 %v1702_v9  ;;  %v1724_v24 = vld [vmem:[%s2635_s1 + $0x124] ss:$24 sps:$4 sm:$0xff]   ;;  %v1728_v26 = vld [vmem:[%s2635_s1 + $0x120] ss:$24 sps:$4 sm:$0xff]   ;;  %v1730_v28 = vld [vmem:[%s2635_s1 + $0x154] ss:$24 sps:$4 sm:$0xff]  }
   0xa   :  { %v1726_v25 = vld [vmem:[%s2635_s1 + $0x424] ss:$24 sps:$4 sm:$0xff]   ;;  %v1729_v27 = vld [vmem:[%s2635_s1 + $0x420] ss:$24 sps:$4 sm:$0xff]   ;;  %v1732_v29 = vld [vmem:[%s2635_s1 + $0x454] ss:$24 sps:$4 sm:$0xff]  }
   0xb   :  { %1219 = vmatpush1.bf16.msra.mxu1 %v1704_v10  ;;  %v1734_v30 = vld [vmem:[%s2635_s1 + $0x150] ss:$24 sps:$4 sm:$0xff]   ;;  %v1736_v32 = vld [vmem:[%s2635_s1 + $0x184] ss:$24 sps:$4 sm:$0xff]   ;;  %v1740_v34 = vld [vmem:[%s2635_s1 + $0x180] ss:$24 sps:$4 sm:$0xff]  }
   0xc   :  { %1260 = vmatpush1.bf16.msra.mxu0 %v1705_v11  ;;  %1220 = vmatprep.subr.bf16.mxu1 %v1706_v12  ;;  %v1735_v31 = vld [vmem:[%s2635_s1 + $0x450] ss:$24 sps:$4 sm:$0xff]   ;;  %v1738_v33 = vld [vmem:[%s2635_s1 + $0x484] ss:$24 sps:$4 sm:$0xff]   ;;  %v1741_v35 = vld [vmem:[%s2635_s1 + $0x480] ss:$24 sps:$4 sm:$0xff]  }
   0xd   :  { %1261 = vmatprep.subr.bf16.mxu0 %v1708_v13  ;;  %v1742_v36 = vld [vmem:[%s2635_s1 + $0x1b4] ss:$24 sps:$4 sm:$0xff]   ;;  %v1746_v38 = vld [vmem:[%s2635_s1 + $0x1b0] ss:$24 sps:$4 sm:$0xff]   ;;  %v1748_v40 = vld [vmem:[%s2635_s1 + $0x1e4] ss:$24 sps:$4 sm:$0xff]  }
   0xe   :  { %v1744_v37 = vld [vmem:[%s2635_s1 + $0x4b4] ss:$24 sps:$4 sm:$0xff]   ;;  %v1747_v39 = vld [vmem:[%s2635_s1 + $0x4b0] ss:$24 sps:$4 sm:$0xff]   ;;  %v1750_v41 = vld [vmem:[%s2635_s1 + $0x4e4] ss:$24 sps:$4 sm:$0xff]  }
   0xf   :  { %1221 = vmatpush1.bf16.msra.mxu1 %v1710_v14  ;;  %v1752_v42 = vld [vmem:[%s2635_s1 + $0x1e0] ss:$24 sps:$4 sm:$0xff]   ;;  %v1754_v44 = vld [vmem:[%s2635_s1 + $0x214] ss:$24 sps:$4 sm:$0xff]   ;;  %v1758_v49 = vld [vmem:[%s2635_s1 + $0x210] ss:$24 sps:$4 sm:$0xff]  }
  0x10   :  { %1262 = vmatpush1.bf16.msra.mxu0 %v1711_v15  ;;  %1222 = vmatprep.subr.bf16.mxu1 %v1712_v16  ;;  %v1753_v43 = vld [vmem:[%s2635_s1 + $0x4e0] ss:$24 sps:$4 sm:$0xff]   ;;  %v1756_v45 = vld [vmem:[%s2635_s1 + $0x514] ss:$24 sps:$4 sm:$0xff]   ;;  %v1759_v50 = vld [vmem:[%s2635_s1 + $0x510] ss:$24 sps:$4 sm:$0xff]  }
  0x11   :  { %1263 = vmatprep.subr.bf16.mxu0 %v1714_v17  ;;  %v14_v46 = vld [vmem:[%s2636_s0] sm:$0xff]  ;;  %v15_v48 = vld [vmem:[%s2636_s0 + $0x8] sm:$0xff]  ;;  %v1796_v10 = vld [vmem:[%s2635_s1 + $0x3c] ss:$24 sps:$4 sm:$0xff]  }
  0x12   :  { %v2153_v47 = vcombine.high %v14_v46, %v14_v46  ;;  %v2164_v51 = vcombine.high %v15_v48, %v15_v48  ;;  %v1760_v52 = vld [vmem:[%s2635_s1 + $0x244] ss:$24 sps:$4 sm:$0xff]   ;;  %v1764_v54 = vld [vmem:[%s2635_s1 + $0x240] ss:$24 sps:$4 sm:$0xff]   ;;  %v1766_v56 = vld [vmem:[%s2635_s1 + $0x274] ss:$24 sps:$4 sm:$0xff]   ;;  %v2222_v6 = vcombine.low %v14_v46, %v14_v46  ;;  %v2224_v7 = vcombine.low %v15_v48, %v15_v48 }
  0x13   :  { %1223 = vmatpush1.bf16.msra.mxu1 %v1716_v18  ;;  %v1762_v53 = vld [vmem:[%s2635_s1 + $0x544] ss:$24 sps:$4 sm:$0xff]   ;;  %v1765_v55 = vld [vmem:[%s2635_s1 + $0x540] ss:$24 sps:$4 sm:$0xff]   ;;  %v1768_v57 = vld [vmem:[%s2635_s1 + $0x574] ss:$24 sps:$4 sm:$0xff]  }
  0x14   :  { %1264 = vmatpush1.bf16.msra.mxu0 %v1717_v19  ;;  %1224 = vmatprep.subr.bf16.mxu1 %v1718_v20  ;;  %v1770_v58 = vld [vmem:[%s2635_s1 + $0x270] ss:$24 sps:$4 sm:$0xff]   ;;  %v1772_v60 = vld [vmem:[%s2635_s1 + $0x2a4] ss:$24 sps:$4 sm:$0xff]   ;;  %v1776_v62 = vld [vmem:[%s2635_s1 + $0x2a0] ss:$24 sps:$4 sm:$0xff]  }
  0x15   :  { %1265 = vmatprep.subr.bf16.mxu0 %v1720_v21  ;;  %1246 = vmatprep.mubr.bf16.mxu1 %v2153_v47  ;;  %v1771_v59 = vld [vmem:[%s2635_s1 + $0x570] ss:$24 sps:$4 sm:$0xff]   ;;  %v1774_v61 = vld [vmem:[%s2635_s1 + $0x5a4] ss:$24 sps:$4 sm:$0xff]   ;;  %v1777_v63 = vld [vmem:[%s2635_s1 + $0x5a0] ss:$24 sps:$4 sm:$0xff]  }
  0x16   :  { %1287 = vmatprep.mubr.bf16.mxu0 %v2164_v51  ;;  %v1778_v0 = vld [vmem:[%s2635_s1 + $0x2d4] ss:$24 sps:$4 sm:$0xff]   ;;  %v1782_v2 = vld [vmem:[%s2635_s1 + $0x2d0] ss:$24 sps:$4 sm:$0xff]   ;;  %v1799_v11 = vld [vmem:[%s2635_s1 + $0x44] ss:$24 sps:$4 sm:$0xff]  }
  0x17   :  { %1225 = vmatpush1.bf16.msra.mxu1 %v1722_v22  ;;  %v1780_v1 = vld [vmem:[%s2635_s1 + $0x5d4] ss:$24 sps:$4 sm:$0xff]   ;;  %v1783_v3 = vld [vmem:[%s2635_s1 + $0x5d0] ss:$24 sps:$4 sm:$0xff]   ;;  %v1797_v13 = vld [vmem:[%s2635_s1 + $0x40] ss:$24 sps:$4 sm:$0xff]  }
  0x18   :  { %1266 = vmatpush1.bf16.msra.mxu0 %v1723_v23  ;;  %1226 = vmatprep.subr.bf16.mxu1 %v1724_v24  ;;  %v1790_v4 = vld [vmem:[%s2635_s1 + $0xc] ss:$24 sps:$4 sm:$0xff]   ;;  %v1788_v8 = vld [vmem:[%s2635_s1 + $0x8] ss:$24 sps:$4 sm:$0xff]   ;;  %v1794_v12 = vld [vmem:[%s2635_s1 + $0x38] ss:$24 sps:$4 sm:$0xff]  }
  0x19   :  { %1267 = vmatprep.subr.bf16.mxu0 %v1726_v25  ;;  %v1793_v5 = vld [vmem:[%s2635_s1 + $0x14] ss:$24 sps:$4 sm:$0xff]   ;;  %v1791_v9 = vld [vmem:[%s2635_s1 + $0x10] ss:$24 sps:$4 sm:$0xff]   ;;  %v1811_v19 = vld [vmem:[%s2635_s1 + $0xa4] ss:$24 sps:$4 sm:$0xff]  }
  0x1a   :  { %v1802_v14 = vld [vmem:[%s2635_s1 + $0x6c] ss:$24 sps:$4 sm:$0xff]   ;;  %v1800_v16 = vld [vmem:[%s2635_s1 + $0x68] ss:$24 sps:$4 sm:$0xff]   ;;  %v1808_v18 = vld [vmem:[%s2635_s1 + $0x9c] ss:$24 sps:$4 sm:$0xff]  }
  0x1b   :  { %1227 = vmatpush1.bf16.msra.mxu1 %v1728_v26  ;;  %v1805_v15 = vld [vmem:[%s2635_s1 + $0x74] ss:$24 sps:$4 sm:$0xff]   ;;  %v1803_v17 = vld [vmem:[%s2635_s1 + $0x70] ss:$24 sps:$4 sm:$0xff]   ;;  %v1809_v21 = vld [vmem:[%s2635_s1 + $0xa0] ss:$24 sps:$4 sm:$0xff]  }
  0x1c   :  { %1268 = vmatpush1.bf16.msra.mxu0 %v1729_v27  ;;  %1228 = vmatprep.subr.bf16.mxu1 %v1730_v28  ;;  %v1806_v20 = vld [vmem:[%s2635_s1 + $0x98] ss:$24 sps:$4 sm:$0xff]   ;;  %v1814_v22 = vld [vmem:[%s2635_s1 + $0xcc] ss:$24 sps:$4 sm:$0xff]   ;;  %v1812_v24 = vld [vmem:[%s2635_s1 + $0xc8] ss:$24 sps:$4 sm:$0xff]  }
  0x1d   :  { %1269 = vmatprep.subr.bf16.mxu0 %v1732_v29  ;;  %v1817_v23 = vld [vmem:[%s2635_s1 + $0xd4] ss:$24 sps:$4 sm:$0xff]   ;;  %v1815_v25 = vld [vmem:[%s2635_s1 + $0xd0] ss:$24 sps:$4 sm:$0xff]   ;;  %v1823_v27 = vld [vmem:[%s2635_s1 + $0x104] ss:$24 sps:$4 sm:$0xff]  }
  0x1e   :  { %v1820_v26 = vld [vmem:[%s2635_s1 + $0xfc] ss:$24 sps:$4 sm:$0xff]   ;;  %v1818_v28 = vld [vmem:[%s2635_s1 + $0xf8] ss:$24 sps:$4 sm:$0xff]   ;;  %v1850_v46 = vld [vmem:[%s2635_s1 + $0x1ec] ss:$24 sps:$4 sm:$0xff]  }
  0x1f   :  { %1229 = vmatpush1.bf16.msra.mxu1 %v1734_v30  ;;  %v1821_v29 = vld [vmem:[%s2635_s1 + $0x100] ss:$24 sps:$4 sm:$0xff]   ;;  %v1826_v30 = vld [vmem:[%s2635_s1 + $0x12c] ss:$24 sps:$4 sm:$0xff]  }
  0x20   :  { %1270 = vmatpush1.bf16.msra.mxu0 %v1735_v31  ;;  %1230 = vmatprep.subr.bf16.mxu1 %v1736_v32  ;;  %v1829_v31 = vld [vmem:[%s2635_s1 + $0x134] ss:$24 sps:$4 sm:$0xff]   ;;  %v1824_v32 = vld [vmem:[%s2635_s1 + $0x128] ss:$24 sps:$4 sm:$0xff]  }
  0x21   :  { %1271 = vmatprep.subr.bf16.mxu0 %v1738_v33  ;;  %v1827_v33 = vld [vmem:[%s2635_s1 + $0x130] ss:$24 sps:$4 sm:$0xff]  }
  0x22   :  { %v1848_v48 = vld [vmem:[%s2635_s1 + $0x1e8] ss:$24 sps:$4 sm:$0xff]  }
  0x23   :  { %1231 = vmatpush1.bf16.msra.mxu1 %v1740_v34  ;;  %v1832_v34 = vld [vmem:[%s2635_s1 + $0x15c] ss:$24 sps:$4 sm:$0xff]  }
  0x24   :  { %1272 = vmatpush1.bf16.msra.mxu0 %v1741_v35  ;;  %1232 = vmatprep.subr.bf16.mxu1 %v1742_v36  ;;  %v1835_v35 = vld [vmem:[%s2635_s1 + $0x164] ss:$24 sps:$4 sm:$0xff]   ;;  %v1830_v36 = vld [vmem:[%s2635_s1 + $0x158] ss:$24 sps:$4 sm:$0xff]  }
  0x25   :  { %1273 = vmatprep.subr.bf16.mxu0 %v1744_v37  ;;  %v1833_v37 = vld [vmem:[%s2635_s1 + $0x160] ss:$24 sps:$4 sm:$0xff]  }
  0x27   :  { %1233 = vmatpush1.bf16.msra.mxu1 %v1746_v38  ;;  %v1838_v38 = vld [vmem:[%s2635_s1 + $0x18c] ss:$24 sps:$4 sm:$0xff]  }
  0x28   :  { %1274 = vmatpush1.bf16.msra.mxu0 %v1747_v39  ;;  %1234 = vmatprep.subr.bf16.mxu1 %v1748_v40  ;;  %v1841_v39 = vld [vmem:[%s2635_s1 + $0x194] ss:$24 sps:$4 sm:$0xff]   ;;  %v1836_v40 = vld [vmem:[%s2635_s1 + $0x188] ss:$24 sps:$4 sm:$0xff]  }
  0x29   :  { %1275 = vmatprep.subr.bf16.mxu0 %v1750_v41  ;;  %v1839_v41 = vld [vmem:[%s2635_s1 + $0x190] ss:$24 sps:$4 sm:$0xff]  }
  0x2b   :  { %1235 = vmatpush1.bf16.msra.mxu1 %v1752_v42  ;;  %v1844_v42 = vld [vmem:[%s2635_s1 + $0x1bc] ss:$24 sps:$4 sm:$0xff]  }
  0x2c   :  { %1276 = vmatpush1.bf16.msra.mxu0 %v1753_v43  ;;  %1236 = vmatprep.subr.bf16.mxu1 %v1754_v44  ;;  %v1847_v43 = vld [vmem:[%s2635_s1 + $0x1c4] ss:$24 sps:$4 sm:$0xff]   ;;  %v1842_v44 = vld [vmem:[%s2635_s1 + $0x1b8] ss:$24 sps:$4 sm:$0xff]  }
  0x2d   :  { %1277 = vmatprep.subr.bf16.mxu0 %v1756_v45  ;;  %v1845_v45 = vld [vmem:[%s2635_s1 + $0x1c0] ss:$24 sps:$4 sm:$0xff]  }
  0x2f   :  { %1237 = vmatpush1.bf16.msra.mxu1 %v1758_v49  ;;  %v1851_v49 = vld [vmem:[%s2635_s1 + $0x1f0] ss:$24 sps:$4 sm:$0xff]  }
  0x30   :  { %1278 = vmatpush1.bf16.msra.mxu0 %v1759_v50  ;;  %1238 = vmatprep.subr.bf16.mxu1 %v1760_v52  ;;  %v1856_v50 = vld [vmem:[%s2635_s1 + $0x21c] ss:$24 sps:$4 sm:$0xff]  }
  0x31   :  { %1279 = vmatprep.subr.bf16.mxu0 %v1762_v53  ;;  %v1859_v52 = vld [vmem:[%s2635_s1 + $0x224] ss:$24 sps:$4 sm:$0xff]   ;;  %v1854_v53 = vld [vmem:[%s2635_s1 + $0x218] ss:$24 sps:$4 sm:$0xff]  }
  0x33   :  { %1239 = vmatpush1.bf16.msra.mxu1 %v1764_v54  ;;  %v1857_v54 = vld [vmem:[%s2635_s1 + $0x220] ss:$24 sps:$4 sm:$0xff]  }
  0x34   :  { %1280 = vmatpush1.bf16.msra.mxu0 %v1765_v55  ;;  %1240 = vmatprep.subr.bf16.mxu1 %v1766_v56  ;;  %v1862_v55 = vld [vmem:[%s2635_s1 + $0x24c] ss:$24 sps:$4 sm:$0xff]  }
  0x35   :  { %1281 = vmatprep.subr.bf16.mxu0 %v1768_v57  ;;  %v1865_v56 = vld [vmem:[%s2635_s1 + $0x254] ss:$24 sps:$4 sm:$0xff]   ;;  %v1860_v57 = vld [vmem:[%s2635_s1 + $0x248] ss:$24 sps:$4 sm:$0xff]  }
  0x37   :  { %1241 = vmatpush1.bf16.msra.mxu1 %v1770_v58  ;;  %v1863_v58 = vld [vmem:[%s2635_s1 + $0x250] ss:$24 sps:$4 sm:$0xff]  }
  0x38   :  { %1282 = vmatpush1.bf16.msra.mxu0 %v1771_v59  ;;  %1242 = vmatprep.subr.bf16.mxu1 %v1772_v60  ;;  %v1868_v59 = vld [vmem:[%s2635_s1 + $0x27c] ss:$24 sps:$4 sm:$0xff]  }
  0x39   :  { %1283 = vmatprep.subr.bf16.mxu0 %v1774_v61  ;;  %v1871_v60 = vld [vmem:[%s2635_s1 + $0x284] ss:$24 sps:$4 sm:$0xff]   ;;  %v1866_v61 = vld [vmem:[%s2635_s1 + $0x278] ss:$24 sps:$4 sm:$0xff]  }
  0x3b   :  { %1243 = vmatpush1.bf16.msra.mxu1 %v1776_v62  ;;  %v1869_v62 = vld [vmem:[%s2635_s1 + $0x280] ss:$24 sps:$4 sm:$0xff]  }
  0x3c   :  { %1284 = vmatpush1.bf16.msra.mxu0 %v1777_v63  ;;  %1244 = vmatprep.subr.bf16.mxu1 %v1778_v0  ;;  %v1874_v63 = vld [vmem:[%s2635_s1 + $0x2ac] ss:$24 sps:$4 sm:$0xff]  }
  0x3d   :  { %1285 = vmatprep.subr.bf16.mxu0 %v1780_v1  ;;  %v1877_v0 = vld [vmem:[%s2635_s1 + $0x2b4] ss:$24 sps:$4 sm:$0xff]   ;;  %v1872_v1 = vld [vmem:[%s2635_s1 + $0x2a8] ss:$24 sps:$4 sm:$0xff]  }
  0x3f   :  { %1245 = vmatpush1.bf16.msra.mxu1 %v1782_v2  ;;  %v1875_v2 = vld [vmem:[%s2635_s1 + $0x2b0] ss:$24 sps:$4 sm:$0xff]  }
  0x40   :  { %1286 = vmatpush1.bf16.msra.mxu0 %v1783_v3  ;;  %1296 = vmatprep.subr.bf16.mxu1 %v1790_v4  ;;  %v1880_v3 = vld [vmem:[%s2635_s1 + $0x2dc] ss:$24 sps:$4 sm:$0xff]  }
  0x41   :  { %1378 = vmatprep.subr.bf16.mxu0 %v1793_v5  ;;  %v1883_v4 = vld [vmem:[%s2635_s1 + $0x2e4] ss:$24 sps:$4 sm:$0xff]   ;;  %v1878_v5 = vld [vmem:[%s2635_s1 + $0x2d8] ss:$24 sps:$4 sm:$0xff]  }
  0x42   :  { %1247 = vmatmul.mubr.bf16.vlgmr.msra.gmra.mrb[0].mxu1 %v2222_v6 }
  0x43   :  { %1288 = vmatmul.mubr.bf16.vlgmr.msra.gmra.mrb[0].mxu0 %v2224_v7  ;;  %1297 = vmatpush1.bf16.msra.mxu1 %v1788_v8  ;;  %v1881_v8 = vld [vmem:[%s2635_s1 + $0x2e0] ss:$24 sps:$4 sm:$0xff]  }
  0x44   :  { %1379 = vmatpush1.bf16.msra.mxu0 %v1791_v9  ;;  %1298 = vmatprep.subr.bf16.mxu1 %v1796_v10  ;;  %v1886_v9 = vld [vmem:[%s2635_s1 + $0x30c] ss:$24 sps:$4 sm:$0xff]  }
  0x45   :  { %1380 = vmatprep.subr.bf16.mxu0 %v1799_v11  ;;  %1328 = vmatprep.mubr.bf16.mxu1 %v2153_v47  ;;  %v1889_v10 = vld [vmem:[%s2635_s1 + $0x314] ss:$24 sps:$4 sm:$0xff]   ;;  %v1884_v11 = vld [vmem:[%s2635_s1 + $0x308] ss:$24 sps:$4 sm:$0xff]  }
  0x46   :  { %1410 = vmatprep.mubr.bf16.mxu0 %v2153_v47  ;;  %v1853_v47 = vld [vmem:[%s2635_s1 + $0x1f4] ss:$24 sps:$4 sm:$0xff]  }
  0x47   :  { %1299 = vmatpush1.bf16.msra.mxu1 %v1794_v12  ;;  %v1887_v12 = vld [vmem:[%s2635_s1 + $0x310] ss:$24 sps:$4 sm:$0xff]  }
  0x48   :  { %1381 = vmatpush1.bf16.msra.mxu0 %v1797_v13  ;;  %1300 = vmatprep.subr.bf16.mxu1 %v1802_v14  ;;  %v1892_v13 = vld [vmem:[%s2635_s1 + $0x33c] ss:$24 sps:$4 sm:$0xff]  }
  0x49   :  { %1382 = vmatprep.subr.bf16.mxu0 %v1805_v15  ;;  %v1895_v14 = vld [vmem:[%s2635_s1 + $0x344] ss:$24 sps:$4 sm:$0xff]   ;;  %v1890_v15 = vld [vmem:[%s2635_s1 + $0x338] ss:$24 sps:$4 sm:$0xff]  }
  0x4b   :  { %1301 = vmatpush1.bf16.msra.mxu1 %v1800_v16  ;;  %v1893_v16 = vld [vmem:[%s2635_s1 + $0x340] ss:$24 sps:$4 sm:$0xff]  }
  0x4c   :  { %1383 = vmatpush1.bf16.msra.mxu0 %v1803_v17  ;;  %1302 = vmatprep.subr.bf16.mxu1 %v1808_v18  ;;  %v1898_v17 = vld [vmem:[%s2635_s1 + $0x36c] ss:$24 sps:$4 sm:$0xff]   ;;  %v1896_v18 = vld [vmem:[%s2635_s1 + $0x368] ss:$24 sps:$4 sm:$0xff]  }
  0x4d   :  { %1384 = vmatprep.subr.bf16.mxu0 %v1811_v19  ;;  %v1899_v19 = vld [vmem:[%s2635_s1 + $0x370] ss:$24 sps:$4 sm:$0xff]  }
  0x4f   :  { %1303 = vmatpush1.bf16.msra.mxu1 %v1806_v20  ;;  %v1904_v20 = vld [vmem:[%s2635_s1 + $0x39c] ss:$24 sps:$4 sm:$0xff]  }
  0x50   :  { %1385 = vmatpush1.bf16.msra.mxu0 %v1809_v21  ;;  %1304 = vmatprep.subr.bf16.mxu1 %v1814_v22  ;;  %v1902_v21 = vld [vmem:[%s2635_s1 + $0x398] ss:$24 sps:$4 sm:$0xff]  }
  0x51   :  { %1386 = vmatprep.subr.bf16.mxu0 %v1817_v23  ;;  %v1905_v22 = vld [vmem:[%s2635_s1 + $0x3a0] ss:$24 sps:$4 sm:$0xff]   ;;  %v1910_v23 = vld [vmem:[%s2635_s1 + $0x3cc] ss:$24 sps:$4 sm:$0xff]  }
  0x53   :  { %1305 = vmatpush1.bf16.msra.mxu1 %v1812_v24  ;;  %v1913_v24 = vld [vmem:[%s2635_s1 + $0x3d4] ss:$24 sps:$4 sm:$0xff]  }
  0x54   :  { %1387 = vmatpush1.bf16.msra.mxu0 %v1815_v25  ;;  %1306 = vmatprep.subr.bf16.mxu1 %v1820_v26  ;;  %v1908_v25 = vld [vmem:[%s2635_s1 + $0x3c8] ss:$24 sps:$4 sm:$0xff]  }
  0x55   :  { %1388 = vmatprep.subr.bf16.mxu0 %v1823_v27  ;;  %v1911_v26 = vld [vmem:[%s2635_s1 + $0x3d0] ss:$24 sps:$4 sm:$0xff]   ;;  %v1916_v27 = vld [vmem:[%s2635_s1 + $0x3fc] ss:$24 sps:$4 sm:$0xff]  }
  0x57   :  { %1307 = vmatpush1.bf16.msra.mxu1 %v1818_v28  ;;  %v1919_v28 = vld [vmem:[%s2635_s1 + $0x404] ss:$24 sps:$4 sm:$0xff]  }
  0x58   :  { %1389 = vmatpush1.bf16.msra.mxu0 %v1821_v29  ;;  %1308 = vmatprep.subr.bf16.mxu1 %v1826_v30  ;;  %v1914_v29 = vld [vmem:[%s2635_s1 + $0x3f8] ss:$24 sps:$4 sm:$0xff]  }
  0x59   :  { %1390 = vmatprep.subr.bf16.mxu0 %v1829_v31  ;;  %v1917_v30 = vld [vmem:[%s2635_s1 + $0x400] ss:$24 sps:$4 sm:$0xff]   ;;  %v1922_v31 = vld [vmem:[%s2635_s1 + $0x42c] ss:$24 sps:$4 sm:$0xff]  }
  0x5b   :  { %1309 = vmatpush1.bf16.msra.mxu1 %v1824_v32  ;;  %v1925_v32 = vld [vmem:[%s2635_s1 + $0x434] ss:$24 sps:$4 sm:$0xff]  }
  0x5c   :  { %1391 = vmatpush1.bf16.msra.mxu0 %v1827_v33  ;;  %1310 = vmatprep.subr.bf16.mxu1 %v1832_v34  ;;  %v1920_v33 = vld [vmem:[%s2635_s1 + $0x428] ss:$24 sps:$4 sm:$0xff]  }
  0x5d   :  { %1392 = vmatprep.subr.bf16.mxu0 %v1835_v35  ;;  %v1923_v34 = vld [vmem:[%s2635_s1 + $0x430] ss:$24 sps:$4 sm:$0xff]   ;;  %v1928_v35 = vld [vmem:[%s2635_s1 + $0x45c] ss:$24 sps:$4 sm:$0xff]  }
  0x5f   :  { %1311 = vmatpush1.bf16.msra.mxu1 %v1830_v36  ;;  %v1931_v36 = vld [vmem:[%s2635_s1 + $0x464] ss:$24 sps:$4 sm:$0xff]  }
  0x60   :  { %1393 = vmatpush1.bf16.msra.mxu0 %v1833_v37  ;;  %1312 = vmatprep.subr.bf16.mxu1 %v1838_v38  ;;  %v1926_v37 = vld [vmem:[%s2635_s1 + $0x458] ss:$24 sps:$4 sm:$0xff]  }
  0x61   :  { %1394 = vmatprep.subr.bf16.mxu0 %v1841_v39  ;;  %v1929_v38 = vld [vmem:[%s2635_s1 + $0x460] ss:$24 sps:$4 sm:$0xff]   ;;  %v1934_v39 = vld [vmem:[%s2635_s1 + $0x48c] ss:$24 sps:$4 sm:$0xff]  }
  0x63   :  { %1313 = vmatpush1.bf16.msra.mxu1 %v1836_v40  ;;  %v1937_v40 = vld [vmem:[%s2635_s1 + $0x494] ss:$24 sps:$4 sm:$0xff]  }
  0x64   :  { %1395 = vmatpush1.bf16.msra.mxu0 %v1839_v41  ;;  %1314 = vmatprep.subr.bf16.mxu1 %v1844_v42  ;;  %v1932_v41 = vld [vmem:[%s2635_s1 + $0x488] ss:$24 sps:$4 sm:$0xff]  }
  0x65   :  { %1396 = vmatprep.subr.bf16.mxu0 %v1847_v43  ;;  %v1935_v42 = vld [vmem:[%s2635_s1 + $0x490] ss:$24 sps:$4 sm:$0xff]   ;;  %v1940_v43 = vld [vmem:[%s2635_s1 + $0x4bc] ss:$24 sps:$4 sm:$0xff]  }
  0x67   :  { %1315 = vmatpush1.bf16.msra.mxu1 %v1842_v44  ;;  %v1943_v44 = vld [vmem:[%s2635_s1 + $0x4c4] ss:$24 sps:$4 sm:$0xff]  }
  0x68   :  { %1397 = vmatpush1.bf16.msra.mxu0 %v1845_v45  ;;  %1316 = vmatprep.subr.bf16.mxu1 %v1850_v46  ;;  %v1938_v45 = vld [vmem:[%s2635_s1 + $0x4b8] ss:$24 sps:$4 sm:$0xff]  }
  0x69   :  { %1398 = vmatprep.subr.bf16.mxu0 %v1853_v47  ;;  %v1941_v46 = vld [vmem:[%s2635_s1 + $0x4c0] ss:$24 sps:$4 sm:$0xff]   ;;  %v1946_v47 = vld [vmem:[%s2635_s1 + $0x4ec] ss:$24 sps:$4 sm:$0xff]  }
  0x6b   :  { %1317 = vmatpush1.bf16.msra.mxu1 %v1848_v48  ;;  %v1949_v48 = vld [vmem:[%s2635_s1 + $0x4f4] ss:$24 sps:$4 sm:$0xff]  }
  0x6c   :  { %1399 = vmatpush1.bf16.msra.mxu0 %v1851_v49  ;;  %1318 = vmatprep.subr.bf16.mxu1 %v1856_v50  ;;  %v1944_v49 = vld [vmem:[%s2635_s1 + $0x4e8] ss:$24 sps:$4 sm:$0xff]  }
  0x6d   :  { %1400 = vmatprep.subr.bf16.mxu0 %v1859_v52  ;;  %v1947_v50 = vld [vmem:[%s2635_s1 + $0x4f0] ss:$24 sps:$4 sm:$0xff]   ;;  %v1952_v52 = vld [vmem:[%s2635_s1 + $0x51c] ss:$24 sps:$4 sm:$0xff]  }
  0x6f   :  { %1319 = vmatpush1.bf16.msra.mxu1 %v1854_v53  ;;  %v1955_v53 = vld [vmem:[%s2635_s1 + $0x524] ss:$24 sps:$4 sm:$0xff]  }
  0x70   :  { %1401 = vmatpush1.bf16.msra.mxu0 %v1857_v54  ;;  %1320 = vmatprep.subr.bf16.mxu1 %v1862_v55  ;;  %v1950_v54 = vld [vmem:[%s2635_s1 + $0x518] ss:$24 sps:$4 sm:$0xff]  }
  0x71   :  { %1402 = vmatprep.subr.bf16.mxu0 %v1865_v56  ;;  %v1953_v55 = vld [vmem:[%s2635_s1 + $0x520] ss:$24 sps:$4 sm:$0xff]   ;;  %v1958_v56 = vld [vmem:[%s2635_s1 + $0x54c] ss:$24 sps:$4 sm:$0xff]  }
  0x73   :  { %1321 = vmatpush1.bf16.msra.mxu1 %v1860_v57  ;;  %v1961_v57 = vld [vmem:[%s2635_s1 + $0x554] ss:$24 sps:$4 sm:$0xff]  }
  0x74   :  { %1403 = vmatpush1.bf16.msra.mxu0 %v1863_v58  ;;  %1322 = vmatprep.subr.bf16.mxu1 %v1868_v59  ;;  %v1956_v58 = vld [vmem:[%s2635_s1 + $0x548] ss:$24 sps:$4 sm:$0xff]  }
  0x75   :  { %1404 = vmatprep.subr.bf16.mxu0 %v1871_v60  ;;  %v1959_v59 = vld [vmem:[%s2635_s1 + $0x550] ss:$24 sps:$4 sm:$0xff]   ;;  %v1964_v60 = vld [vmem:[%s2635_s1 + $0x57c] ss:$24 sps:$4 sm:$0xff]  }
  0x77   :  { %1323 = vmatpush1.bf16.msra.mxu1 %v1866_v61  ;;  %v1967_v61 = vld [vmem:[%s2635_s1 + $0x584] ss:$24 sps:$4 sm:$0xff]  }
  0x78   :  { %1405 = vmatpush1.bf16.msra.mxu0 %v1869_v62  ;;  %1324 = vmatprep.subr.bf16.mxu1 %v1874_v63  ;;  %v1962_v62 = vld [vmem:[%s2635_s1 + $0x578] ss:$24 sps:$4 sm:$0xff]  }
  0x79   :  { %1406 = vmatprep.subr.bf16.mxu0 %v1877_v0  ;;  %v1965_v63 = vld [vmem:[%s2635_s1 + $0x580] ss:$24 sps:$4 sm:$0xff]   ;;  %v1970_v0 = vld [vmem:[%s2635_s1 + $0x5ac] ss:$24 sps:$4 sm:$0xff]  }
  0x7b   :  { %1325 = vmatpush1.bf16.msra.mxu1 %v1872_v1  ;;  %v1973_v1 = vld [vmem:[%s2635_s1 + $0x5b4] ss:$24 sps:$4 sm:$0xff]  }
  0x7c   :  { %1407 = vmatpush1.bf16.msra.mxu0 %v1875_v2  ;;  %1326 = vmatprep.subr.bf16.mxu1 %v1880_v3  ;;  %v1968_v2 = vld [vmem:[%s2635_s1 + $0x5a8] ss:$24 sps:$4 sm:$0xff]  }
  0x7d   :  { %1408 = vmatprep.subr.bf16.mxu0 %v1883_v4  ;;  %v1971_v3 = vld [vmem:[%s2635_s1 + $0x5b0] ss:$24 sps:$4 sm:$0xff]   ;;  %v1976_v4 = vld [vmem:[%s2635_s1 + $0x5dc] ss:$24 sps:$4 sm:$0xff]  }
  0x7f   :  { %1327 = vmatpush1.bf16.msra.mxu1 %v1878_v5  ;;  %v1979_v5 = vld [vmem:[%s2635_s1 + $0x5e4] ss:$24 sps:$4 sm:$0xff]  }
  0x80   :  { %1409 = vmatpush1.bf16.msra.mxu0 %v1881_v8  ;;  %1337 = vmatprep.subr.bf16.mxu1 %v1886_v9  ;;  %v1974_v8 = vld [vmem:[%s2635_s1 + $0x5d8] ss:$24 sps:$4 sm:$0xff]  }
  0x81   :  { %1419 = vmatprep.subr.bf16.mxu0 %v1889_v10  ;;  %v1977_v9 = vld [vmem:[%s2635_s1 + $0x5e0] ss:$24 sps:$4 sm:$0xff]   ;;  %v210_v10 = vlaneseq }
  0x82   :  { %1329 = vmatmul.mubr.bf16.vlgmr.msra.gmra.mrb[4].mxu1 %v2222_v6 }
  0x83   :  { %1411 = vmatmul.mubr.bf16.vlgmr.msra.gmra.mrb[4].mxu0 %v2222_v6  ;;  %1338 = vmatpush1.bf16.msra.mxu1 %v1884_v11  ;;  %v1901_v6 = vld [vmem:[%s2635_s1 + $0x374] ss:$24 sps:$4 sm:$0xff]   ;;  %v211_v11 = vshrl.u32 %v210_v10, 7 }
  0x84   :  { %1420 = vmatpush1.bf16.msra.mxu0 %v1887_v12  ;;  %1339 = vmatprep.subr.bf16.mxu1 %v1892_v13  ;;  %v208_v13 = vld [vmem:[%s2637_s2] sm:$0x3f] }
  0x85   :  { %1421 = vmatprep.subr.bf16.mxu0 %v1895_v14  ;;  %1369 = vmatprep.mubr.bf16.mxu1 %v2164_v51  ;;  %v212_v12 = vsub.s32 0, %v211_v11  ;;  %v216_v14 = vsub.s32 1, %v211_v11 }
  0x86   :  { %1451 = vmatprep.mubr.bf16.mxu0 %v2164_v51  ;;  %v1907_v51 = vld [vmem:[%s2635_s1 + $0x3a4] ss:$24 sps:$4 sm:$0xff]  }
  0x87   :  { %1340 = vmatpush1.bf16.msra.mxu1 %v1890_v15  ;;  %v213_v15 = vrot.slane %v208_v13, %v212_v12 }
  0x88   :  { %1422 = vmatpush1.bf16.msra.mxu0 %v1893_v16  ;;  %1341 = vmatprep.subr.bf16.mxu1 %v1898_v17  ;;  %v217_v16 = vrot.slane %v208_v13, %v216_v14 }
  0x89   :  { %1423 = vmatprep.subr.bf16.mxu0 %v1901_v6 }
  0x8b   :  { %1342 = vmatpush1.bf16.msra.mxu1 %v1896_v18 }
  0x8c   :  { %1424 = vmatpush1.bf16.msra.mxu0 %v1899_v19  ;;  %1343 = vmatprep.subr.bf16.mxu1 %v1904_v20 }
  0x8d   :  { %1425 = vmatprep.subr.bf16.mxu0 %v1907_v51 }
  0x8f   :  { %1344 = vmatpush1.bf16.msra.mxu1 %v1902_v21 }
  0x90   :  { %1426 = vmatpush1.bf16.msra.mxu0 %v1905_v22  ;;  %1345 = vmatprep.subr.bf16.mxu1 %v1910_v23 }
  0x91   :  { %1427 = vmatprep.subr.bf16.mxu0 %v1913_v24 }
  0x93   :  { %1346 = vmatpush1.bf16.msra.mxu1 %v1908_v25 }
  0x94   :  { %1428 = vmatpush1.bf16.msra.mxu0 %v1911_v26  ;;  %1347 = vmatprep.subr.bf16.mxu1 %v1916_v27 }
  0x95   :  { %1429 = vmatprep.subr.bf16.mxu0 %v1919_v28  ;;  %v220_v28 = vsub.s32 2, %v211_v11 }
  0x97   :  { %1348 = vmatpush1.bf16.msra.mxu1 %v1914_v29  ;;  %v228_v29 = vsub.s32 4, %v211_v11 }
  0x98   :  { %1430 = vmatpush1.bf16.msra.mxu0 %v1917_v30  ;;  %1349 = vmatprep.subr.bf16.mxu1 %v1922_v31  ;;  %v224_v30 = vsub.s32 3, %v211_v11  ;;  %v232_v31 = vsub.s32 5, %v211_v11 }
  0x99   :  { %1431 = vmatprep.subr.bf16.mxu0 %v1925_v32  ;;  %v221_v32 = vrot.slane %v208_v13, %v220_v28 }
  0x9b   :  { %1350 = vmatpush1.bf16.msra.mxu1 %v1920_v33  ;;  %v229_v33 = vrot.slane %v208_v13, %v228_v29 }
  0x9c   :  { %1432 = vmatpush1.bf16.msra.mxu0 %v1923_v34  ;;  %1351 = vmatprep.subr.bf16.mxu1 %v1928_v35  ;;  %v225_v34 = vrot.slane %v208_v13, %v224_v30  ;;  %v233_v35 = vrot.slane %v208_v13, %v232_v31 }
  0x9d   :  { %1433 = vmatprep.subr.bf16.mxu0 %v1931_v36 }
  0x9f   :  { %1352 = vmatpush1.bf16.msra.mxu1 %v1926_v37 }
  0xa0   :  { %1434 = vmatpush1.bf16.msra.mxu0 %v1929_v38  ;;  %1353 = vmatprep.subr.bf16.mxu1 %v1934_v39 }
  0xa1   :  { %1435 = vmatprep.subr.bf16.mxu0 %v1937_v40 }
  0xa3   :  { %1354 = vmatpush1.bf16.msra.mxu1 %v1932_v41 }
  0xa4   :  { %1436 = vmatpush1.bf16.msra.mxu0 %v1935_v42  ;;  %1355 = vmatprep.subr.bf16.mxu1 %v1940_v43 }
  0xa5   :  { %1437 = vmatprep.subr.bf16.mxu0 %v1943_v44 }
  0xa7   :  { %1356 = vmatpush1.bf16.msra.mxu1 %v1938_v45 }
  0xa8   :  { %1438 = vmatpush1.bf16.msra.mxu0 %v1941_v46  ;;  %1357 = vmatprep.subr.bf16.mxu1 %v1946_v47 }
  0xa9   :  { %1439 = vmatprep.subr.bf16.mxu0 %v1949_v48 }
  0xab   :  { %1358 = vmatpush1.bf16.msra.mxu1 %v1944_v49 }
  0xac   :  { %1440 = vmatpush1.bf16.msra.mxu0 %v1947_v50  ;;  %1359 = vmatprep.subr.bf16.mxu1 %v1952_v52 }
  0xad   :  { %1441 = vmatprep.subr.bf16.mxu0 %v1955_v53 }
  0xaf   :  { %1360 = vmatpush1.bf16.msra.mxu1 %v1950_v54 }
  0xb0   :  { %1442 = vmatpush1.bf16.msra.mxu0 %v1953_v55  ;;  %1361 = vmatprep.subr.bf16.mxu1 %v1958_v56 }
  0xb1   :  { %1443 = vmatprep.subr.bf16.mxu0 %v1961_v57 }
  0xb3   :  { %1362 = vmatpush1.bf16.msra.mxu1 %v1956_v58 }
  0xb4   :  { %1444 = vmatpush1.bf16.msra.mxu0 %v1959_v59  ;;  %1363 = vmatprep.subr.bf16.mxu1 %v1964_v60 }
  0xb5   :  { %1445 = vmatprep.subr.bf16.mxu0 %v1967_v61 }
  0xb7   :  { %1364 = vmatpush1.bf16.msra.mxu1 %v1962_v62 }
  0xb8   :  { %1446 = vmatpush1.bf16.msra.mxu0 %v1965_v63  ;;  %1365 = vmatprep.subr.bf16.mxu1 %v1970_v0 }
  0xb9   :  { %1447 = vmatprep.subr.bf16.mxu0 %v1973_v1 }
  0xbb   :  { %1366 = vmatpush1.bf16.msra.mxu1 %v1968_v2 }
  0xbc   :  { %1448 = vmatpush1.bf16.msra.mxu0 %v1971_v3  ;;  %1367 = vmatprep.subr.bf16.mxu1 %v1976_v4 }
  0xbd   :  { %1449 = vmatprep.subr.bf16.mxu0 %v1979_v5 }
  0xbf   :  { %1368 = vmatpush1.bf16.msra.mxu1 %v1974_v8 }
  0xc0   :  { %1450 = vmatpush1.bf16.msra.mxu0 %v1977_v9 }
  0xc2   :  { %1370 = vmatmul.mubr.bf16.vlgmr.msra.gmra.mrb[4].mxu1 %v2224_v7 }
  0xc3   :  { %1452 = vmatmul.mubr.bf16.vlgmr.msra.gmra.mrb[4].mxu0 %v2224_v7 }
 0x115   :  { %v1248_v17 = vpop.f32.mrb[0].mxu1 }
 0x116   :  { %v1289_v6 = vpop.f32.mrb[0].mxu0  ;;  %v1249_v18 = vadd.f32 %v1248_v17, %v213_v15  ;;  %v1250_v19 = vpop.f32.mrb[1].mxu1 }
 0x117   :  { %v1291_v20 = vpop.f32.mrb[1].mxu0  ;;  %v1251_v51 = vadd.f32 %v1250_v19, %v217_v16  ;;  %v1252_v21 = vpop.f32.mrb[2].mxu1 }
 0x118   :  { %v1293_v22 = vpop.f32.mrb[2].mxu0  ;;  %v1290_v23 = vadd.f32 %v1289_v6, %v1249_v18  ;;  %v1253_v7 = vpop.f32.mrb[3].mxu1 }
 0x119   :  { %v1294_v24 = vpop.f32.mrb[3].mxu0  ;;  %v1292_v25 = vadd.f32 %v1291_v20, %v1251_v51 }
 0x11a   :  { %1980 = vtanh.f32 %v1290_v23 }
 0x11b   :  { %1982 = vtanh.f32 %v1292_v25 }
 0x124   :  { %v1981_v26 = vpop.eup %1980 }
 0x125   :  { %v1983_v27 = vpop.eup %1982  ;;  %1466 = vst [vmem:[%s2638_s3] sm:$0xff] %v1981_v26 }
 0x126   :  { %1467 = vst [vmem:[%s2638_s3 + $0x8] sm:$0xff] %v1983_v27 }
 0x195   :  { %v1371_v36 = vpop.f32.mrb[4].mxu1 }
 0x196   :  { %v1453_v37 = vpop.f32.mrb[4].mxu0  ;;  %v1676_v38 = vadd.f32 %v1371_v36, %v221_v32  ;;  %v1373_v40 = vpop.f32.mrb[5].mxu1 }
 0x197   :  { %v1678_v39 = vadd.f32 %v1453_v37, %v229_v33  ;;  %v1455_v41 = vpop.f32.mrb[5].mxu0  ;;  %v1677_v42 = vadd.f32 %v1373_v40, %v225_v34  ;;  %v1375_v44 = vpop.f32.mrb[6].mxu1 }
 0x198   :  { %v1679_v43 = vadd.f32 %v1455_v41, %v233_v35  ;;  %v1457_v45 = vpop.f32.mrb[6].mxu0  ;;  %1984 = vtanh.f32 %v1676_v38  ;;  %v1376_v46 = vpop.f32.mrb[7].mxu1 }
 0x199   :  { %v1458_v47 = vpop.f32.mrb[7].mxu0  ;;  %1986 = vtanh.f32 %v1678_v39 }
 0x19a   :  { %1988 = vtanh.f32 %v1677_v42 }
 0x19b   :  { %1990 = vtanh.f32 %v1679_v43 }
 0x1a2   :  { %v1985_v48 = vpop.eup %1984 }
 0x1a3   :  { %v1987_v49 = vpop.eup %1986  ;;  %1468 = vst [vmem:[%s2638_s3 + $0x10] sm:$0xff] %v1985_v48 }
 0x1a4   :  { %v1989_v50 = vpop.eup %1988  ;;  %1470 = vst [vmem:[%s2638_s3 + $0x20] sm:$0xff] %v1987_v49 }
 0x1a5   :  { %v1991_v52 = vpop.eup %1990  ;;  %1469 = vst [vmem:[%s2638_s3 + $0x18] sm:$0xff] %v1989_v50 }
 0x1a6   :  { %1471 = vst [vmem:[%s2638_s3 + $0x28] sm:$0xff] %v1991_v52 }

</bundles_post_ra>
